<compile_context>
chip_gen: v7x
topology: tpu7x:2x2x1
jax: 0.10.0
libtpu: 0.0.40
codegen_flags: <defaults>
</compile_context>

<pallas_src>
import math

import jax
import jax.numpy as jnp
from jax.experimental import pallas as pl
from jax.experimental.pallas import tpu as pltpu

# ----- small synthetic BERT config (pretrained bert-base weights are not loadable here) -----
BATCH = 2
SEQ = 8
HIDDEN = 32
NUM_HEADS = 2
HEAD_DIM = HIDDEN // NUM_HEADS
FFN = 4 * HIDDEN
NUM_LAYERS = 2
VOCAB = 100
TYPE_VOCAB = 2
MAX_POS = 16
NUM_CLASSES = 3
LN_EPS = 1e-12

TOKENS = BATCH * SEQ          # flattened token rows, SEQUENCE-major: row r = (s = r//B, b = r%B)
LANE = 128                    # lane-dense width for packed slabs and the logits store
CLS_PAD = 8                   # pooler/classifier tile: first 8 rows (>= BATCH [CLS] rows)
NEG_INF = -1e9

# bf16 weight-slab row offsets (all slices start-aligned, rows are multiples of 8/16)
W1_ROW = 0
WQKV_ROW = HIDDEN
WO_ROW = 2 * HIDDEN
W2_ROW = 3 * HIDDEN
W_SLAB_ROWS = 3 * HIDDEN + FFN          # 224


# ---------------------------------------------------------------------------
# in-kernel helpers (all f32)
# ---------------------------------------------------------------------------
def _layer_norm(x, gamma, beta):
    mean = jnp.mean(x, axis=-1, keepdims=True)
    var = jnp.mean((x - mean) ** 2, axis=-1, keepdims=True)
    return (x - mean) * jax.lax.rsqrt(var + LN_EPS) * gamma + beta


def _gelu(x):
    # TODO(synk): BERT uses exact erf-GELU; tanh approximation kept for robust Mosaic lowering.
    c = math.sqrt(2.0 / math.pi)
    return 0.5 * x * (1.0 + jnp.tanh(c * (x + 0.044715 * x * x * x)))


# ---------------------------------------------------------------------------
# fused Pallas kernel: single invocation, unrolled layer loop, all data resident in VMEM
# ---------------------------------------------------------------------------
def bert_fused_kernel(emb_ref, kmask_ref, cvec_ref, cw_ref, wslab_ref, vslab_ref, out_ref):
    f32 = jnp.float32
    bf16 = jnp.bfloat16

    # ---- embedding LayerNorm (scale/shift live in the packed constant f32 slab) ----
    emb_g = cvec_ref[1:2, 0:HIDDEN]
    emb_b = cvec_ref[2:3, 0:HIDDEN]
    x = _layer_norm(emb_ref[...], emb_g, emb_b)                      # (T, H) f32

    # ---- block-diagonal example mask rebuilt from 2-D iota (only a (1,T) key mask comes from HBM)
    #      rows are sequence-major, so the example id of row r is r % BATCH.
    q_ex = jax.lax.broadcasted_iota(jnp.int32, (TOKENS, TOKENS), 0) % BATCH
    k_ex = jax.lax.broadcasted_iota(jnp.int32, (TOKENS, TOKENS), 1) % BATCH
    same_example = q_ex == k_ex                                      # (T, T) bool
    key_add = kmask_ref[...]                                         # (1, T) additive 0 / -1e9

    scale = 1.0 / math.sqrt(HEAD_DIM)

    # NUM_LAYERS = 2: fully-unrolled static layer loop; weight slabs already resident in VMEM.
    for l in range(NUM_LAYERS):
        w1 = wslab_ref[l, W1_ROW:W1_ROW + HIDDEN, 0:FFN]                       # (H, FFN)  bf16
        wqkv = wslab_ref[l, WQKV_ROW:WQKV_ROW + HIDDEN, 0:3 * HIDDEN]          # (H, 3H)   bf16
        wo = wslab_ref[l, WO_ROW:WO_ROW + HIDDEN, 0:HIDDEN]                    # (H, H)    bf16
        w2 = wslab_ref[l, W2_ROW:W2_ROW + FFN, 0:HIDDEN]                       # (FFN, H)  bf16
        b1 = vslab_ref[l, 0:1, 0:FFN]
        bqkv = vslab_ref[l, 1:2, 0:3 * HIDDEN]
        bo = vslab_ref[l, 2:3, 0:HIDDEN]
        ln1_g = vslab_ref[l, 3:4, 0:HIDDEN]
        ln1_b = vslab_ref[l, 4:5, 0:HIDDEN]
        b2 = vslab_ref[l, 5:6, 0:HIDDEN]
        ln2_g = vslab_ref[l, 6:7, 0:HIDDEN]
        ln2_b = vslab_ref[l, 7:8, 0:HIDDEN]

        # ---- fused QKV projection: ONE lane-dense (T,H)x(H,3H) MXU matmul ----
        x_bf = x.astype(bf16)
        qkv = jnp.dot(x_bf, wqkv, preferred_element_type=f32) + bqkv           # (T, 3H) f32

        # ---- per-head attention (NUM_HEADS=2, unrolled); f32 softmax stats ----
        # TODO(synk): at real SEQ switch to KV-tiled online-softmax (flash-style) with a
        # token-parallel grid axis for the v7x second TensorCore; (T,T) is fine at T=16.
        ctx_heads = []
        for h in range(NUM_HEADS):
            q = qkv[:, h * HEAD_DIM:(h + 1) * HEAD_DIM]
            k = qkv[:, HIDDEN + h * HEAD_DIM:HIDDEN + (h + 1) * HEAD_DIM]
            v = qkv[:, 2 * HIDDEN + h * HEAD_DIM:2 * HIDDEN + (h + 1) * HEAD_DIM]
            s = jax.lax.dot_general(q, k, (((1,), (1,)), ((), ())),
                                    preferred_element_type=f32) * scale        # (T, T)
            s = jnp.where(same_example, s + key_add, NEG_INF)
            s = s - jnp.max(s, axis=-1, keepdims=True)
            p = jnp.exp(s)
            p = p * pl.reciprocal(jnp.sum(p, axis=-1, keepdims=True), approx=True)
            ctx_heads.append(jnp.dot(p.astype(bf16), v.astype(bf16),
                                     preferred_element_type=f32))              # (T, HD)

        # head re-combination: single lane concat + one (T,H)x(H,H) output projection
        ctx = jnp.concatenate(ctx_heads, axis=-1)                               # (T, H)
        attn = jnp.dot(ctx.astype(bf16), wo, preferred_element_type=f32) + bo
        x = _layer_norm(x + attn, ln1_g, ln1_b)

        # ---- FFN (bf16 weights, f32 accumulation / elementwise) ----
        h_mid = _gelu(jnp.dot(x.astype(bf16), w1, preferred_element_type=f32) + b1)
        ffn = jnp.dot(h_mid.astype(bf16), w2, preferred_element_type=f32) + b2
        x = _layer_norm(x + ffn, ln2_g, ln2_b)

    # ---- pooler + classifier on the leading CLS_PAD rows only ([CLS] rows are rows 0..BATCH-1
    #      thanks to sequence-major ordering); logits are stored lane-dense (CLS_PAD, 128).
    cls_x = x[0:CLS_PAD, :].astype(bf16)                                        # (8, H)
    pool_w = cw_ref[HIDDEN:2 * HIDDEN, 0:HIDDEN]                                # (H, H)   bf16
    cls_w = cw_ref[0:HIDDEN, :]                                                 # (H, 128) bf16
    pool_b = cvec_ref[3:4, 0:HIDDEN]
    cls_b = cvec_ref[0:1, :]
    pooled = jnp.tanh(jnp.dot(cls_x, pool_w, preferred_element_type=f32) + pool_b)
    # TODO(synk): nn.Dropout(p=0.1) is identity at inference (eval mode); train RNG not modeled.
    out_ref[...] = jnp.dot(pooled.astype(bf16), cls_w, preferred_element_type=f32) + cls_b


# ---------------------------------------------------------------------------
# parameters + slab packing (plain-JAX glue)
# ---------------------------------------------------------------------------
def init_params(key):
    keys = iter(jax.random.split(key, 64))

    def nrm(shape, scale=0.02):
        return (scale * jax.random.normal(next(keys), shape)).astype(jnp.float32)

    params = {
        "word_emb": nrm((VOCAB, HIDDEN)),
        "pos_emb": nrm((MAX_POS, HIDDEN)),
        "type_emb": nrm((TYPE_VOCAB, HIDDEN)),
        "emb_ln_g": jnp.ones((1, HIDDEN), jnp.float32),
        "emb_ln_b": jnp.zeros((1, HIDDEN), jnp.float32),
        "layers": [],
        "pool_w": nrm((HIDDEN, HIDDEN)),
        "pool_b": jnp.zeros((1, HIDDEN), jnp.float32),
        "cls_w": nrm((HIDDEN, NUM_CLASSES)),
        "cls_b": jnp.zeros((1, NUM_CLASSES), jnp.float32),
    }
    for _ in range(NUM_LAYERS):
        params["layers"].append({
            "wq": nrm((HIDDEN, HIDDEN)), "bq": jnp.zeros((1, HIDDEN), jnp.float32),
            "wk": nrm((HIDDEN, HIDDEN)), "bk": jnp.zeros((1, HIDDEN), jnp.float32),
            "wv": nrm((HIDDEN, HIDDEN)), "bv": jnp.zeros((1, HIDDEN), jnp.float32),
            "wo": nrm((HIDDEN, HIDDEN)), "bo": jnp.zeros((1, HIDDEN), jnp.float32),
            "ln1_g": jnp.ones((1, HIDDEN), jnp.float32),
            "ln1_b": jnp.zeros((1, HIDDEN), jnp.float32),
            "w1": nrm((HIDDEN, FFN)), "b1": jnp.zeros((1, FFN), jnp.float32),
            "w2": nrm((FFN, HIDDEN)), "b2": jnp.zeros((1, HIDDEN), jnp.float32),
            "ln2_g": jnp.ones((1, HIDDEN), jnp.float32),
            "ln2_b": jnp.zeros((1, HIDDEN), jnp.float32),
        })
    return params


def _pack_weight_slabs(params):
    """Per-layer params -> one bf16 weight slab (L,224,128) + one f32 bias/LN slab (L,8,128)."""
    bf16 = jnp.bfloat16
    w_slab = jnp.zeros((NUM_LAYERS, W_SLAB_ROWS, LANE), bf16)
    v_slab = jnp.zeros((NUM_LAYERS, 8, LANE), jnp.float32)
    for i, lyr in enumerate(params["layers"]):
        wqkv = jnp.concatenate([lyr["wq"], lyr["wk"], lyr["wv"]], axis=1)   # (H, 3H)
        bqkv = jnp.concatenate([lyr["bq"], lyr["bk"], lyr["bv"]], axis=1)   # (1, 3H)
        w_slab = w_slab.at[i, W1_ROW:W1_ROW + HIDDEN, 0:FFN].set(lyr["w1"].astype(bf16))
        w_slab = w_slab.at[i, WQKV_ROW:WQKV_ROW + HIDDEN, 0:3 * HIDDEN].set(wqkv.astype(bf16))
        w_slab = w_slab.at[i, WO_ROW:WO_ROW + HIDDEN, 0:HIDDEN].set(lyr["wo"].astype(bf16))
        w_slab = w_slab.at[i, W2_ROW:W2_ROW + FFN, 0:HIDDEN].set(lyr["w2"].astype(bf16))
        for r, vec in ((0, lyr["b1"]), (1, bqkv), (2, lyr["bo"]), (3, lyr["ln1_g"]),
                       (4, lyr["ln1_b"]), (5, lyr["b2"]), (6, lyr["ln2_g"]), (7, lyr["ln2_b"])):
            v_slab = v_slab.at[i, r, 0:vec.shape[1]].set(vec[0])
    return w_slab, v_slab


def _pack_const_slabs(params):
    """Embedding-LN / pooler / classifier params -> one f32 vector slab + one bf16 weight slab."""
    bf16 = jnp.bfloat16
    cvec = jnp.zeros((8, LANE), jnp.float32)
    cvec = cvec.at[0, 0:NUM_CLASSES].set(params["cls_b"][0])
    cvec = cvec.at[1, 0:HIDDEN].set(params["emb_ln_g"][0])
    cvec = cvec.at[2, 0:HIDDEN].set(params["emb_ln_b"][0])
    cvec = cvec.at[3, 0:HIDDEN].set(params["pool_b"][0])
    cw = jnp.zeros((2 * HIDDEN, LANE), bf16)
    cw = cw.at[0:HIDDEN, 0:NUM_CLASSES].set(params["cls_w"].astype(bf16))
    cw = cw.at[HIDDEN:2 * HIDDEN, 0:HIDDEN].set(params["pool_w"].astype(bf16))
    return cvec, cw


# ---------------------------------------------------------------------------
# forward pass
# ---------------------------------------------------------------------------
def email_classifier_forward(params, input_ids, attention_mask, token_type_ids):
    B, S = input_ids.shape
    T = B * S

    # --- embeddings (gathers are plain-JAX glue), re-ordered SEQUENCE-major so the per-example
    #     [CLS] rows land contiguously at rows 0..B-1 (static in-kernel slice, no strided gather)
    positions = jnp.arange(S)
    emb = (params["word_emb"][input_ids]
           + params["pos_emb"][positions][None, :, :]
           + params["type_emb"][token_type_ids])                               # (B, S, H)
    emb = jnp.transpose(emb, (1, 0, 2)).reshape(T, HIDDEN).astype(jnp.float32)

    # --- O(B*S) additive key mask (block-diagonal example structure rebuilt in-kernel from iota)
    key_ok = jnp.transpose(attention_mask).reshape(1, T)                        # sequence-major
    key_add = jnp.where(key_ok > 0, 0.0, NEG_INF).astype(jnp.float32)

    w_slab, v_slab = _pack_weight_slabs(params)
    cvec, cw = _pack_const_slabs(params)

    out = pl.pallas_call(
        bert_fused_kernel,
        out_shape=jax.ShapeDtypeStruct((CLS_PAD, LANE), jnp.float32),
        # Grid-less single invocation: all slabs (~120 KiB) DMA'd into VMEM once, layer loop
        # unrolled in-kernel — per-grid-step and per-DMA-descriptor overhead eliminated.
        compiler_params=pltpu.CompilerParams(vmem_limit_bytes=16 * 1024 * 1024),
    )(emb, key_add, cvec, cw, w_slab, v_slab)

    # [CLS] logits per example; drop sublane/lane padding (pure JAX glue)
    return out[:B, :NUM_CLASSES]


if __name__ == "__main__":
    key = jax.random.PRNGKey(0)
    pkey, dkey = jax.random.split(key)
    params = init_params(pkey)

    input_ids = jax.random.randint(dkey, (BATCH, SEQ), 0, VOCAB, dtype=jnp.int32)
    attention_mask = jnp.ones((BATCH, SEQ), jnp.int32).at[1, SEQ - 2:].set(0)
    token_type_ids = jnp.zeros((BATCH, SEQ), jnp.int32)

    logits = email_classifier_forward(params, input_ids, attention_mask, token_type_ids)
    logits = jax.block_until_ready(logits)
    assert logits.shape == (BATCH, NUM_CLASSES)
    assert bool(jnp.all(jnp.isfinite(logits)))
    print("KERNEL_OK")
</pallas_src>

<mosaic_0001>
module attributes {stable_mosaic.version = 11 : i64} {
  func.func @bert_fused_kernel(%arg0: memref<16x32xf32, #tpu.memory_space<vmem>>, %arg1: memref<1x16xf32, #tpu.memory_space<vmem>>, %arg2: memref<8x128xf32, #tpu.memory_space<vmem>>, %arg3: memref<64x128xbf16, #tpu.memory_space<vmem>>, %arg4: memref<2x224x128xbf16, #tpu.memory_space<vmem>>, %arg5: memref<2x8x128xf32, #tpu.memory_space<vmem>>, %arg6: memref<8x128xf32, #tpu.memory_space<vmem>>) attributes {dimension_semantics = [], scalar_prefetch = 0 : i64, scratch_operands = 0 : i64, tpu.core_type = #tpu.core_type<tc>} {
    %c1 = arith.constant 1 : index
    %c0 = arith.constant 0 : index
    %0 = vector.load %arg2[%c1, %c0] : memref<8x128xf32, #tpu.memory_space<vmem>>, vector<1x32xf32>
    %c2 = arith.constant 2 : index
    %c0_0 = arith.constant 0 : index
    %1 = vector.load %arg2[%c2, %c0_0] : memref<8x128xf32, #tpu.memory_space<vmem>>, vector<1x32xf32>
    %c0_1 = arith.constant 0 : index
    %c0_2 = arith.constant 0 : index
    %2 = vector.load %arg0[%c0_1, %c0_2] : memref<16x32xf32, #tpu.memory_space<vmem>>, vector<16x32xf32>
    %cst = arith.constant dense<0.000000e+00> : vector<16xf32>
    %3 = vector.multi_reduction <add>, %2, %cst [1] : vector<16x32xf32> to vector<16xf32>
    %4 = vector.shape_cast %3 : vector<16xf32> to vector<16x1xf32>
    %cst_3 = arith.constant 3.200000e+01 : f32
    %5 = vector.broadcast %cst_3 : f32 to vector<16x1xf32>
    %6 = arith.divf %4, %5 : vector<16x1xf32>
    %7 = vector.broadcast %6 : vector<16x1xf32> to vector<16x32xf32>
    %8 = arith.subf %2, %7 : vector<16x32xf32>
    %9 = arith.mulf %8, %8 : vector<16x32xf32>
    %cst_4 = arith.constant dense<0.000000e+00> : vector<16xf32>
    %10 = vector.multi_reduction <add>, %9, %cst_4 [1] : vector<16x32xf32> to vector<16xf32>
    %11 = vector.shape_cast %10 : vector<16xf32> to vector<16x1xf32>
    %cst_5 = arith.constant 3.200000e+01 : f32
    %12 = vector.broadcast %cst_5 : f32 to vector<16x1xf32>
    %13 = arith.divf %11, %12 : vector<16x1xf32>
    %14 = vector.broadcast %6 : vector<16x1xf32> to vector<16x32xf32>
    %15 = arith.subf %2, %14 : vector<16x32xf32>
    %cst_6 = arith.constant 9.99999996E-13 : f32
    %16 = vector.broadcast %cst_6 : f32 to vector<16x1xf32>
    %17 = arith.addf %13, %16 : vector<16x1xf32>
    %18 = math.rsqrt %17 : vector<16x1xf32>
    %19 = vector.broadcast %18 : vector<16x1xf32> to vector<16x32xf32>
    %20 = arith.mulf %15, %19 : vector<16x32xf32>
    %21 = vector.broadcast %0 : vector<1x32xf32> to vector<16x32xf32>
    %22 = arith.mulf %20, %21 : vector<16x32xf32>
    %23 = vector.broadcast %1 : vector<1x32xf32> to vector<16x32xf32>
    %24 = arith.addf %22, %23 : vector<16x32xf32>
    %25 = tpu.iota {dimensions = array<i32: 0>} : vector<16x16xi32>
    %c2_i32 = arith.constant 2 : i32
    %c0_i32 = arith.constant 0 : i32
    %26 = arith.cmpi eq, %c2_i32, %c0_i32 : i32
    %c1_i32 = arith.constant 1 : i32
    %27 = arith.select %26, %c1_i32, %c2_i32 : i32
    %28 = vector.broadcast %27 : i32 to vector<16x16xi32>
    %29 = arith.remsi %25, %28 : vector<16x16xi32>
    %c0_i32_7 = arith.constant 0 : i32
    %30 = vector.broadcast %c0_i32_7 : i32 to vector<16x16xi32>
    %31 = arith.cmpi ne, %29, %30 : vector<16x16xi32>
    %c0_i32_8 = arith.constant 0 : i32
    %32 = vector.broadcast %c0_i32_8 : i32 to vector<16x16xi32>
    %33 = arith.cmpi slt, %29, %32 : vector<16x16xi32>
    %c0_i32_9 = arith.constant 0 : i32
    %34 = arith.cmpi slt, %27, %c0_i32_9 : i32
    %35 = vector.broadcast %34 : i1 to vector<16x16xi1>
    %36 = vector.broadcast %35 : vector<16x16xi1> to vector<16x16xi1>
    %37 = arith.xori %33, %36 : vector<16x16xi1>
    %38 = arith.andi %37, %31 : vector<16x16xi1>
    %39 = vector.broadcast %27 : i32 to vector<16x16xi32>
    %40 = arith.addi %29, %39 : vector<16x16xi32>
    %41 = arith.select %38, %40, %29 : vector<16x16xi1>, vector<16x16xi32>
    %42 = tpu.iota {dimensions = array<i32: 1>} : vector<16x16xi32>
    %c2_i32_10 = arith.constant 2 : i32
    %c0_i32_11 = arith.constant 0 : i32
    %43 = arith.cmpi eq, %c2_i32_10, %c0_i32_11 : i32
    %c1_i32_12 = arith.constant 1 : i32
    %44 = arith.select %43, %c1_i32_12, %c2_i32_10 : i32
    %45 = vector.broadcast %44 : i32 to vector<16x16xi32>
    %46 = arith.remsi %42, %45 : vector<16x16xi32>
    %c0_i32_13 = arith.constant 0 : i32
    %47 = vector.broadcast %c0_i32_13 : i32 to vector<16x16xi32>
    %48 = arith.cmpi ne, %46, %47 : vector<16x16xi32>
    %c0_i32_14 = arith.constant 0 : i32
    %49 = vector.broadcast %c0_i32_14 : i32 to vector<16x16xi32>
    %50 = arith.cmpi slt, %46, %49 : vector<16x16xi32>
    %c0_i32_15 = arith.constant 0 : i32
    %51 = arith.cmpi slt, %44, %c0_i32_15 : i32
    %52 = vector.broadcast %51 : i1 to vector<16x16xi1>
    %53 = vector.broadcast %52 : vector<16x16xi1> to vector<16x16xi1>
    %54 = arith.xori %50, %53 : vector<16x16xi1>
    %55 = arith.andi %54, %48 : vector<16x16xi1>
    %56 = vector.broadcast %44 : i32 to vector<16x16xi32>
    %57 = arith.addi %46, %56 : vector<16x16xi32>
    %58 = arith.select %55, %57, %46 : vector<16x16xi1>, vector<16x16xi32>
    %59 = arith.cmpi eq, %41, %58 : vector<16x16xi32>
    %c0_16 = arith.constant 0 : index
    %c0_17 = arith.constant 0 : index
    %60 = vector.load %arg1[%c0_16, %c0_17] : memref<1x16xf32, #tpu.memory_space<vmem>>, vector<1x16xf32>
    %c0_18 = arith.constant 0 : index
    %c0_19 = arith.constant 0 : index
    %c0_20 = arith.constant 0 : index
    %61 = vector.load %arg4[%c0_18, %c0_19, %c0_20] : memref<2x224x128xbf16, #tpu.memory_space<vmem>>, vector<1x32x128xbf16>
    %62 = vector.shape_cast %61 : vector<1x32x128xbf16> to vector<32x128xbf16>
    %c0_21 = arith.constant 0 : index
    %c32 = arith.constant 32 : index
    %c0_22 = arith.constant 0 : index
    %63 = vector.load %arg4[%c0_21, %c32, %c0_22] : memref<2x224x128xbf16, #tpu.memory_space<vmem>>, vector<1x32x96xbf16>
    %64 = vector.shape_cast %63 : vector<1x32x96xbf16> to vector<32x96xbf16>
    %c0_23 = arith.constant 0 : index
    %c64 = arith.constant 64 : index
    %c0_24 = arith.constant 0 : index
    %65 = vector.load %arg4[%c0_23, %c64, %c0_24] : memref<2x224x128xbf16, #tpu.memory_space<vmem>>, vector<1x32x32xbf16>
    %66 = vector.shape_cast %65 : vector<1x32x32xbf16> to vector<32x32xbf16>
    %c0_25 = arith.constant 0 : index
    %c96 = arith.constant 96 : index
    %c0_26 = arith.constant 0 : index
    %67 = vector.load %arg4[%c0_25, %c96, %c0_26] : memref<2x224x128xbf16, #tpu.memory_space<vmem>>, vector<1x128x32xbf16>
    %68 = vector.shape_cast %67 : vector<1x128x32xbf16> to vector<128x32xbf16>
    %c0_27 = arith.constant 0 : index
    %c0_28 = arith.constant 0 : index
    %c0_29 = arith.constant 0 : index
    %69 = vector.load %arg5[%c0_27, %c0_28, %c0_29] : memref<2x8x128xf32, #tpu.memory_space<vmem>>, vector<1x1x128xf32>
    %70 = vector.shape_cast %69 : vector<1x1x128xf32> to vector<1x128xf32>
    %c0_30 = arith.constant 0 : index
    %c1_31 = arith.constant 1 : index
    %c0_32 = arith.constant 0 : index
    %71 = vector.load %arg5[%c0_30, %c1_31, %c0_32] : memref<2x8x128xf32, #tpu.memory_space<vmem>>, vector<1x1x96xf32>
    %72 = vector.shape_cast %71 : vector<1x1x96xf32> to vector<1x96xf32>
    %c0_33 = arith.constant 0 : index
    %c2_34 = arith.constant 2 : index
    %c0_35 = arith.constant 0 : index
    %73 = vector.load %arg5[%c0_33, %c2_34, %c0_35] : memref<2x8x128xf32, #tpu.memory_space<vmem>>, vector<1x1x32xf32>
    %74 = vector.shape_cast %73 : vector<1x1x32xf32> to vector<1x32xf32>
    %c0_36 = arith.constant 0 : index
    %c3 = arith.constant 3 : index
    %c0_37 = arith.constant 0 : index
    %75 = vector.load %arg5[%c0_36, %c3, %c0_37] : memref<2x8x128xf32, #tpu.memory_space<vmem>>, vector<1x1x32xf32>
    %76 = vector.shape_cast %75 : vector<1x1x32xf32> to vector<1x32xf32>
    %c0_38 = arith.constant 0 : index
    %c4 = arith.constant 4 : index
    %c0_39 = arith.constant 0 : index
    %77 = vector.load %arg5[%c0_38, %c4, %c0_39] : memref<2x8x128xf32, #tpu.memory_space<vmem>>, vector<1x1x32xf32>
    %78 = vector.shape_cast %77 : vector<1x1x32xf32> to vector<1x32xf32>
    %c0_40 = arith.constant 0 : index
    %c5 = arith.constant 5 : index
    %c0_41 = arith.constant 0 : index
    %79 = vector.load %arg5[%c0_40, %c5, %c0_41] : memref<2x8x128xf32, #tpu.memory_space<vmem>>, vector<1x1x32xf32>
    %80 = vector.shape_cast %79 : vector<1x1x32xf32> to vector<1x32xf32>
    %c0_42 = arith.constant 0 : index
    %c6 = arith.constant 6 : index
    %c0_43 = arith.constant 0 : index
    %81 = vector.load %arg5[%c0_42, %c6, %c0_43] : memref<2x8x128xf32, #tpu.memory_space<vmem>>, vector<1x1x32xf32>
    %82 = vector.shape_cast %81 : vector<1x1x32xf32> to vector<1x32xf32>
    %c0_44 = arith.constant 0 : index
    %c7 = arith.constant 7 : index
    %c0_45 = arith.constant 0 : index
    %83 = vector.load %arg5[%c0_44, %c7, %c0_45] : memref<2x8x128xf32, #tpu.memory_space<vmem>>, vector<1x1x32xf32>
    %84 = vector.shape_cast %83 : vector<1x1x32xf32> to vector<1x32xf32>
    %85 = arith.truncf %24 : vector<16x32xf32> to vector<16x32xbf16>
    %cst_46 = arith.constant dense<0.000000e+00> : vector<16x96xf32>
    %86 = tpu.matmul %85, %64, %cst_46 {dimension_numbers = #tpu.dot_dimension_numbers<[1], [0], [0], [1], [0, 0, 1, 1], [], []>} : vector<16x32xbf16>, vector<32x96xbf16>, vector<16x96xf32> -> vector<16x96xf32>
    %87 = vector.broadcast %72 : vector<1x96xf32> to vector<16x96xf32>
    %88 = arith.addf %86, %87 : vector<16x96xf32>
    %89 = vector.extract_strided_slice %88 {offsets = [0, 0], sizes = [16, 16], strides = [1, 1]} : vector<16x96xf32> to vector<16x16xf32>
    %90 = vector.extract_strided_slice %88 {offsets = [0, 32], sizes = [16, 16], strides = [1, 1]} : vector<16x96xf32> to vector<16x16xf32>
    %91 = vector.extract_strided_slice %88 {offsets = [0, 64], sizes = [16, 16], strides = [1, 1]} : vector<16x96xf32> to vector<16x16xf32>
    %cst_47 = arith.constant dense<0.000000e+00> : vector<16x16xf32>
    %92 = tpu.matmul %89, %90, %cst_47 {dimension_numbers = #tpu.dot_dimension_numbers<[1], [1], [0], [0], [0, 0, 1, 0], [], []>} : vector<16x16xf32>, vector<16x16xf32>, vector<16x16xf32> -> vector<16x16xf32>
    %cst_48 = arith.constant 2.500000e-01 : f32
    %93 = vector.broadcast %cst_48 : f32 to vector<16x16xf32>
    %94 = arith.mulf %92, %93 : vector<16x16xf32>
    %95 = vector.broadcast %60 : vector<1x16xf32> to vector<16x16xf32>
    %96 = arith.addf %94, %95 : vector<16x16xf32>
    %cst_49 = arith.constant -1.000000e+09 : f32
    %97 = vector.broadcast %cst_49 : f32 to vector<16x16xf32>
    %98 = arith.select %59, %96, %97 : vector<16x16xi1>, vector<16x16xf32>
    %cst_50 = arith.constant dense<0xFF800000> : vector<16xf32>
    %99 = vector.multi_reduction <maximumf>, %98, %cst_50 [1] : vector<16x16xf32> to vector<16xf32>
    %100 = vector.shape_cast %99 : vector<16xf32> to vector<16x1xf32>
    %101 = vector.broadcast %100 : vector<16x1xf32> to vector<16x16xf32>
    %102 = arith.subf %98, %101 : vector<16x16xf32>
    %103 = math.exp %102 : vector<16x16xf32>
    %cst_51 = arith.constant dense<0.000000e+00> : vector<16xf32>
    %104 = vector.multi_reduction <add>, %103, %cst_51 [1] : vector<16x16xf32> to vector<16xf32>
    %105 = vector.shape_cast %104 : vector<16xf32> to vector<16x1xf32>
    %106 = tpu.reciprocal %105 {approx = true} : vector<16x1xf32> -> vector<16x1xf32>
    %107 = vector.broadcast %106 : vector<16x1xf32> to vector<16x16xf32>
    %108 = arith.mulf %103, %107 : vector<16x16xf32>
    %109 = arith.truncf %108 : vector<16x16xf32> to vector<16x16xbf16>
    %110 = arith.truncf %91 : vector<16x16xf32> to vector<16x16xbf16>
    %cst_52 = arith.constant dense<0.000000e+00> : vector<16x16xf32>
    %111 = tpu.matmul %109, %110, %cst_52 {dimension_numbers = #tpu.dot_dimension_numbers<[1], [0], [0], [1], [0, 0, 1, 1], [], []>} : vector<16x16xbf16>, vector<16x16xbf16>, vector<16x16xf32> -> vector<16x16xf32>
    %112 = vector.extract_strided_slice %88 {offsets = [0, 16], sizes = [16, 16], strides = [1, 1]} : vector<16x96xf32> to vector<16x16xf32>
    %113 = vector.extract_strided_slice %88 {offsets = [0, 48], sizes = [16, 16], strides = [1, 1]} : vector<16x96xf32> to vector<16x16xf32>
    %114 = vector.extract_strided_slice %88 {offsets = [0, 80], sizes = [16, 16], strides = [1, 1]} : vector<16x96xf32> to vector<16x16xf32>
    %cst_53 = arith.constant dense<0.000000e+00> : vector<16x16xf32>
    %115 = tpu.matmul %112, %113, %cst_53 {dimension_numbers = #tpu.dot_dimension_numbers<[1], [1], [0], [0], [0, 0, 1, 0], [], []>} : vector<16x16xf32>, vector<16x16xf32>, vector<16x16xf32> -> vector<16x16xf32>
    %cst_54 = arith.constant 2.500000e-01 : f32
    %116 = vector.broadcast %cst_54 : f32 to vector<16x16xf32>
    %117 = arith.mulf %115, %116 : vector<16x16xf32>
    %118 = vector.broadcast %60 : vector<1x16xf32> to vector<16x16xf32>
    %119 = arith.addf %117, %118 : vector<16x16xf32>
    %cst_55 = arith.constant -1.000000e+09 : f32
    %120 = vector.broadcast %cst_55 : f32 to vector<16x16xf32>
    %121 = arith.select %59, %119, %120 : vector<16x16xi1>, vector<16x16xf32>
    %cst_56 = arith.constant dense<0xFF800000> : vector<16xf32>
    %122 = vector.multi_reduction <maximumf>, %121, %cst_56 [1] : vector<16x16xf32> to vector<16xf32>
    %123 = vector.shape_cast %122 : vector<16xf32> to vector<16x1xf32>
    %124 = vector.broadcast %123 : vector<16x1xf32> to vector<16x16xf32>
    %125 = arith.subf %121, %124 : vector<16x16xf32>
    %126 = math.exp %125 : vector<16x16xf32>
    %cst_57 = arith.constant dense<0.000000e+00> : vector<16xf32>
    %127 = vector.multi_reduction <add>, %126, %cst_57 [1] : vector<16x16xf32> to vector<16xf32>
    %128 = vector.shape_cast %127 : vector<16xf32> to vector<16x1xf32>
    %129 = tpu.reciprocal %128 {approx = true} : vector<16x1xf32> -> vector<16x1xf32>
    %130 = vector.broadcast %129 : vector<16x1xf32> to vector<16x16xf32>
    %131 = arith.mulf %126, %130 : vector<16x16xf32>
    %132 = arith.truncf %131 : vector<16x16xf32> to vector<16x16xbf16>
    %133 = arith.truncf %114 : vector<16x16xf32> to vector<16x16xbf16>
    %cst_58 = arith.constant dense<0.000000e+00> : vector<16x16xf32>
    %134 = tpu.matmul %132, %133, %cst_58 {dimension_numbers = #tpu.dot_dimension_numbers<[1], [0], [0], [1], [0, 0, 1, 1], [], []>} : vector<16x16xbf16>, vector<16x16xbf16>, vector<16x16xf32> -> vector<16x16xf32>
    %135 = tpu.concatenate %111, %134 in 1 : vector<16x16xf32>, vector<16x16xf32> -> vector<16x32xf32>
    %136 = arith.truncf %135 : vector<16x32xf32> to vector<16x32xbf16>
    %cst_59 = arith.constant dense<0.000000e+00> : vector<16x32xf32>
    %137 = tpu.matmul %136, %66, %cst_59 {dimension_numbers = #tpu.dot_dimension_numbers<[1], [0], [0], [1], [0, 0, 1, 1], [], []>} : vector<16x32xbf16>, vector<32x32xbf16>, vector<16x32xf32> -> vector<16x32xf32>
    %138 = vector.broadcast %74 : vector<1x32xf32> to vector<16x32xf32>
    %139 = arith.addf %137, %138 : vector<16x32xf32>
    %140 = arith.addf %24, %139 : vector<16x32xf32>
    %cst_60 = arith.constant dense<0.000000e+00> : vector<16xf32>
    %141 = vector.multi_reduction <add>, %140, %cst_60 [1] : vector<16x32xf32> to vector<16xf32>
    %142 = vector.shape_cast %141 : vector<16xf32> to vector<16x1xf32>
    %cst_61 = arith.constant 3.200000e+01 : f32
    %143 = vector.broadcast %cst_61 : f32 to vector<16x1xf32>
    %144 = arith.divf %142, %143 : vector<16x1xf32>
    %145 = vector.broadcast %144 : vector<16x1xf32> to vector<16x32xf32>
    %146 = arith.subf %140, %145 : vector<16x32xf32>
    %147 = arith.mulf %146, %146 : vector<16x32xf32>
    %cst_62 = arith.constant dense<0.000000e+00> : vector<16xf32>
    %148 = vector.multi_reduction <add>, %147, %cst_62 [1] : vector<16x32xf32> to vector<16xf32>
    %149 = vector.shape_cast %148 : vector<16xf32> to vector<16x1xf32>
    %cst_63 = arith.constant 3.200000e+01 : f32
    %150 = vector.broadcast %cst_63 : f32 to vector<16x1xf32>
    %151 = arith.divf %149, %150 : vector<16x1xf32>
    %152 = vector.broadcast %144 : vector<16x1xf32> to vector<16x32xf32>
    %153 = arith.subf %140, %152 : vector<16x32xf32>
    %cst_64 = arith.constant 9.99999996E-13 : f32
    %154 = vector.broadcast %cst_64 : f32 to vector<16x1xf32>
    %155 = arith.addf %151, %154 : vector<16x1xf32>
    %156 = math.rsqrt %155 : vector<16x1xf32>
    %157 = vector.broadcast %156 : vector<16x1xf32> to vector<16x32xf32>
    %158 = arith.mulf %153, %157 : vector<16x32xf32>
    %159 = vector.broadcast %76 : vector<1x32xf32> to vector<16x32xf32>
    %160 = arith.mulf %158, %159 : vector<16x32xf32>
    %161 = vector.broadcast %78 : vector<1x32xf32> to vector<16x32xf32>
    %162 = arith.addf %160, %161 : vector<16x32xf32>
    %163 = arith.truncf %162 : vector<16x32xf32> to vector<16x32xbf16>
    %cst_65 = arith.constant dense<0.000000e+00> : vector<16x128xf32>
    %164 = tpu.matmul %163, %62, %cst_65 {dimension_numbers = #tpu.dot_dimension_numbers<[1], [0], [0], [1], [0, 0, 1, 1], [], []>} : vector<16x32xbf16>, vector<32x128xbf16>, vector<16x128xf32> -> vector<16x128xf32>
    %165 = vector.broadcast %70 : vector<1x128xf32> to vector<16x128xf32>
    %166 = arith.addf %164, %165 : vector<16x128xf32>
    %cst_66 = arith.constant 5.000000e-01 : f32
    %167 = vector.broadcast %cst_66 : f32 to vector<16x128xf32>
    %168 = arith.mulf %167, %166 : vector<16x128xf32>
    %cst_67 = arith.constant 4.471500e-02 : f32
    %169 = vector.broadcast %cst_67 : f32 to vector<16x128xf32>
    %170 = arith.mulf %169, %166 : vector<16x128xf32>
    %171 = arith.mulf %170, %166 : vector<16x128xf32>
    %172 = arith.mulf %171, %166 : vector<16x128xf32>
    %173 = arith.addf %166, %172 : vector<16x128xf32>
    %cst_68 = arith.constant 0.797884583 : f32
    %174 = vector.broadcast %cst_68 : f32 to vector<16x128xf32>
    %175 = arith.mulf %174, %173 : vector<16x128xf32>
    %176 = math.tanh %175 : vector<16x128xf32>
    %cst_69 = arith.constant 1.000000e+00 : f32
    %177 = vector.broadcast %cst_69 : f32 to vector<16x128xf32>
    %178 = arith.addf %177, %176 : vector<16x128xf32>
    %179 = arith.mulf %168, %178 : vector<16x128xf32>
    %180 = arith.truncf %179 : vector<16x128xf32> to vector<16x128xbf16>
    %cst_70 = arith.constant dense<0.000000e+00> : vector<16x32xf32>
    %181 = tpu.matmul %180, %68, %cst_70 {dimension_numbers = #tpu.dot_dimension_numbers<[1], [0], [0], [1], [0, 0, 1, 1], [], []>} : vector<16x128xbf16>, vector<128x32xbf16>, vector<16x32xf32> -> vector<16x32xf32>
    %182 = vector.broadcast %80 : vector<1x32xf32> to vector<16x32xf32>
    %183 = arith.addf %181, %182 : vector<16x32xf32>
    %184 = arith.addf %162, %183 : vector<16x32xf32>
    %cst_71 = arith.constant dense<0.000000e+00> : vector<16xf32>
    %185 = vector.multi_reduction <add>, %184, %cst_71 [1] : vector<16x32xf32> to vector<16xf32>
    %186 = vector.shape_cast %185 : vector<16xf32> to vector<16x1xf32>
    %cst_72 = arith.constant 3.200000e+01 : f32
    %187 = vector.broadcast %cst_72 : f32 to vector<16x1xf32>
    %188 = arith.divf %186, %187 : vector<16x1xf32>
    %189 = vector.broadcast %188 : vector<16x1xf32> to vector<16x32xf32>
    %190 = arith.subf %184, %189 : vector<16x32xf32>
    %191 = arith.mulf %190, %190 : vector<16x32xf32>
    %cst_73 = arith.constant dense<0.000000e+00> : vector<16xf32>
    %192 = vector.multi_reduction <add>, %191, %cst_73 [1] : vector<16x32xf32> to vector<16xf32>
    %193 = vector.shape_cast %192 : vector<16xf32> to vector<16x1xf32>
    %cst_74 = arith.constant 3.200000e+01 : f32
    %194 = vector.broadcast %cst_74 : f32 to vector<16x1xf32>
    %195 = arith.divf %193, %194 : vector<16x1xf32>
    %196 = vector.broadcast %188 : vector<16x1xf32> to vector<16x32xf32>
    %197 = arith.subf %184, %196 : vector<16x32xf32>
    %cst_75 = arith.constant 9.99999996E-13 : f32
    %198 = vector.broadcast %cst_75 : f32 to vector<16x1xf32>
    %199 = arith.addf %195, %198 : vector<16x1xf32>
    %200 = math.rsqrt %199 : vector<16x1xf32>
    %201 = vector.broadcast %200 : vector<16x1xf32> to vector<16x32xf32>
    %202 = arith.mulf %197, %201 : vector<16x32xf32>
    %203 = vector.broadcast %82 : vector<1x32xf32> to vector<16x32xf32>
    %204 = arith.mulf %202, %203 : vector<16x32xf32>
    %205 = vector.broadcast %84 : vector<1x32xf32> to vector<16x32xf32>
    %206 = arith.addf %204, %205 : vector<16x32xf32>
    %c1_76 = arith.constant 1 : index
    %c0_77 = arith.constant 0 : index
    %c0_78 = arith.constant 0 : index
    %207 = vector.load %arg4[%c1_76, %c0_77, %c0_78] : memref<2x224x128xbf16, #tpu.memory_space<vmem>>, vector<1x32x128xbf16>
    %208 = vector.shape_cast %207 : vector<1x32x128xbf16> to vector<32x128xbf16>
    %c1_79 = arith.constant 1 : index
    %c32_80 = arith.constant 32 : index
    %c0_81 = arith.constant 0 : index
    %209 = vector.load %arg4[%c1_79, %c32_80, %c0_81] : memref<2x224x128xbf16, #tpu.memory_space<vmem>>, vector<1x32x96xbf16>
    %210 = vector.shape_cast %209 : vector<1x32x96xbf16> to vector<32x96xbf16>
    %c1_82 = arith.constant 1 : index
    %c64_83 = arith.constant 64 : index
    %c0_84 = arith.constant 0 : index
    %211 = vector.load %arg4[%c1_82, %c64_83, %c0_84] : memref<2x224x128xbf16, #tpu.memory_space<vmem>>, vector<1x32x32xbf16>
    %212 = vector.shape_cast %211 : vector<1x32x32xbf16> to vector<32x32xbf16>
    %c1_85 = arith.constant 1 : index
    %c96_86 = arith.constant 96 : index
    %c0_87 = arith.constant 0 : index
    %213 = vector.load %arg4[%c1_85, %c96_86, %c0_87] : memref<2x224x128xbf16, #tpu.memory_space<vmem>>, vector<1x128x32xbf16>
    %214 = vector.shape_cast %213 : vector<1x128x32xbf16> to vector<128x32xbf16>
    %c1_88 = arith.constant 1 : index
    %c0_89 = arith.constant 0 : index
    %c0_90 = arith.constant 0 : index
    %215 = vector.load %arg5[%c1_88, %c0_89, %c0_90] : memref<2x8x128xf32, #tpu.memory_space<vmem>>, vector<1x1x128xf32>
    %216 = vector.shape_cast %215 : vector<1x1x128xf32> to vector<1x128xf32>
    %c1_91 = arith.constant 1 : index
    %c1_92 = arith.constant 1 : index
    %c0_93 = arith.constant 0 : index
    %217 = vector.load %arg5[%c1_91, %c1_92, %c0_93] : memref<2x8x128xf32, #tpu.memory_space<vmem>>, vector<1x1x96xf32>
    %218 = vector.shape_cast %217 : vector<1x1x96xf32> to vector<1x96xf32>
    %c1_94 = arith.constant 1 : index
    %c2_95 = arith.constant 2 : index
    %c0_96 = arith.constant 0 : index
    %219 = vector.load %arg5[%c1_94, %c2_95, %c0_96] : memref<2x8x128xf32, #tpu.memory_space<vmem>>, vector<1x1x32xf32>
    %220 = vector.shape_cast %219 : vector<1x1x32xf32> to vector<1x32xf32>
    %c1_97 = arith.constant 1 : index
    %c3_98 = arith.constant 3 : index
    %c0_99 = arith.constant 0 : index
    %221 = vector.load %arg5[%c1_97, %c3_98, %c0_99] : memref<2x8x128xf32, #tpu.memory_space<vmem>>, vector<1x1x32xf32>
    %222 = vector.shape_cast %221 : vector<1x1x32xf32> to vector<1x32xf32>
    %c1_100 = arith.constant 1 : index
    %c4_101 = arith.constant 4 : index
    %c0_102 = arith.constant 0 : index
    %223 = vector.load %arg5[%c1_100, %c4_101, %c0_102] : memref<2x8x128xf32, #tpu.memory_space<vmem>>, vector<1x1x32xf32>
    %224 = vector.shape_cast %223 : vector<1x1x32xf32> to vector<1x32xf32>
    %c1_103 = arith.constant 1 : index
    %c5_104 = arith.constant 5 : index
    %c0_105 = arith.constant 0 : index
    %225 = vector.load %arg5[%c1_103, %c5_104, %c0_105] : memref<2x8x128xf32, #tpu.memory_space<vmem>>, vector<1x1x32xf32>
    %226 = vector.shape_cast %225 : vector<1x1x32xf32> to vector<1x32xf32>
    %c1_106 = arith.constant 1 : index
    %c6_107 = arith.constant 6 : index
    %c0_108 = arith.constant 0 : index
    %227 = vector.load %arg5[%c1_106, %c6_107, %c0_108] : memref<2x8x128xf32, #tpu.memory_space<vmem>>, vector<1x1x32xf32>
    %228 = vector.shape_cast %227 : vector<1x1x32xf32> to vector<1x32xf32>
    %c1_109 = arith.constant 1 : index
    %c7_110 = arith.constant 7 : index
    %c0_111 = arith.constant 0 : index
    %229 = vector.load %arg5[%c1_109, %c7_110, %c0_111] : memref<2x8x128xf32, #tpu.memory_space<vmem>>, vector<1x1x32xf32>
    %230 = vector.shape_cast %229 : vector<1x1x32xf32> to vector<1x32xf32>
    %231 = arith.truncf %206 : vector<16x32xf32> to vector<16x32xbf16>
    %cst_112 = arith.constant dense<0.000000e+00> : vector<16x96xf32>
    %232 = tpu.matmul %231, %210, %cst_112 {dimension_numbers = #tpu.dot_dimension_numbers<[1], [0], [0], [1], [0, 0, 1, 1], [], []>} : vector<16x32xbf16>, vector<32x96xbf16>, vector<16x96xf32> -> vector<16x96xf32>
    %233 = vector.broadcast %218 : vector<1x96xf32> to vector<16x96xf32>
    %234 = arith.addf %232, %233 : vector<16x96xf32>
    %235 = vector.extract_strided_slice %234 {offsets = [0, 0], sizes = [16, 16], strides = [1, 1]} : vector<16x96xf32> to vector<16x16xf32>
    %236 = vector.extract_strided_slice %234 {offsets = [0, 32], sizes = [16, 16], strides = [1, 1]} : vector<16x96xf32> to vector<16x16xf32>
    %237 = vector.extract_strided_slice %234 {offsets = [0, 64], sizes = [16, 16], strides = [1, 1]} : vector<16x96xf32> to vector<16x16xf32>
    %cst_113 = arith.constant dense<0.000000e+00> : vector<16x16xf32>
    %238 = tpu.matmul %235, %236, %cst_113 {dimension_numbers = #tpu.dot_dimension_numbers<[1], [1], [0], [0], [0, 0, 1, 0], [], []>} : vector<16x16xf32>, vector<16x16xf32>, vector<16x16xf32> -> vector<16x16xf32>
    %cst_114 = arith.constant 2.500000e-01 : f32
    %239 = vector.broadcast %cst_114 : f32 to vector<16x16xf32>
    %240 = arith.mulf %238, %239 : vector<16x16xf32>
    %241 = vector.broadcast %60 : vector<1x16xf32> to vector<16x16xf32>
    %242 = arith.addf %240, %241 : vector<16x16xf32>
    %cst_115 = arith.constant -1.000000e+09 : f32
    %243 = vector.broadcast %cst_115 : f32 to vector<16x16xf32>
    %244 = arith.select %59, %242, %243 : vector<16x16xi1>, vector<16x16xf32>
    %cst_116 = arith.constant dense<0xFF800000> : vector<16xf32>
    %245 = vector.multi_reduction <maximumf>, %244, %cst_116 [1] : vector<16x16xf32> to vector<16xf32>
    %246 = vector.shape_cast %245 : vector<16xf32> to vector<16x1xf32>
    %247 = vector.broadcast %246 : vector<16x1xf32> to vector<16x16xf32>
    %248 = arith.subf %244, %247 : vector<16x16xf32>
    %249 = math.exp %248 : vector<16x16xf32>
    %cst_117 = arith.constant dense<0.000000e+00> : vector<16xf32>
    %250 = vector.multi_reduction <add>, %249, %cst_117 [1] : vector<16x16xf32> to vector<16xf32>
    %251 = vector.shape_cast %250 : vector<16xf32> to vector<16x1xf32>
    %252 = tpu.reciprocal %251 {approx = true} : vector<16x1xf32> -> vector<16x1xf32>
    %253 = vector.broadcast %252 : vector<16x1xf32> to vector<16x16xf32>
    %254 = arith.mulf %249, %253 : vector<16x16xf32>
    %255 = arith.truncf %254 : vector<16x16xf32> to vector<16x16xbf16>
    %256 = arith.truncf %237 : vector<16x16xf32> to vector<16x16xbf16>
    %cst_118 = arith.constant dense<0.000000e+00> : vector<16x16xf32>
    %257 = tpu.matmul %255, %256, %cst_118 {dimension_numbers = #tpu.dot_dimension_numbers<[1], [0], [0], [1], [0, 0, 1, 1], [], []>} : vector<16x16xbf16>, vector<16x16xbf16>, vector<16x16xf32> -> vector<16x16xf32>
    %258 = vector.extract_strided_slice %234 {offsets = [0, 16], sizes = [16, 16], strides = [1, 1]} : vector<16x96xf32> to vector<16x16xf32>
    %259 = vector.extract_strided_slice %234 {offsets = [0, 48], sizes = [16, 16], strides = [1, 1]} : vector<16x96xf32> to vector<16x16xf32>
    %260 = vector.extract_strided_slice %234 {offsets = [0, 80], sizes = [16, 16], strides = [1, 1]} : vector<16x96xf32> to vector<16x16xf32>
    %cst_119 = arith.constant dense<0.000000e+00> : vector<16x16xf32>
    %261 = tpu.matmul %258, %259, %cst_119 {dimension_numbers = #tpu.dot_dimension_numbers<[1], [1], [0], [0], [0, 0, 1, 0], [], []>} : vector<16x16xf32>, vector<16x16xf32>, vector<16x16xf32> -> vector<16x16xf32>
    %cst_120 = arith.constant 2.500000e-01 : f32
    %262 = vector.broadcast %cst_120 : f32 to vector<16x16xf32>
    %263 = arith.mulf %261, %262 : vector<16x16xf32>
    %264 = vector.broadcast %60 : vector<1x16xf32> to vector<16x16xf32>
    %265 = arith.addf %263, %264 : vector<16x16xf32>
    %cst_121 = arith.constant -1.000000e+09 : f32
    %266 = vector.broadcast %cst_121 : f32 to vector<16x16xf32>
    %267 = arith.select %59, %265, %266 : vector<16x16xi1>, vector<16x16xf32>
    %cst_122 = arith.constant dense<0xFF800000> : vector<16xf32>
    %268 = vector.multi_reduction <maximumf>, %267, %cst_122 [1] : vector<16x16xf32> to vector<16xf32>
    %269 = vector.shape_cast %268 : vector<16xf32> to vector<16x1xf32>
    %270 = vector.broadcast %269 : vector<16x1xf32> to vector<16x16xf32>
    %271 = arith.subf %267, %270 : vector<16x16xf32>
    %272 = math.exp %271 : vector<16x16xf32>
    %cst_123 = arith.constant dense<0.000000e+00> : vector<16xf32>
    %273 = vector.multi_reduction <add>, %272, %cst_123 [1] : vector<16x16xf32> to vector<16xf32>
    %274 = vector.shape_cast %273 : vector<16xf32> to vector<16x1xf32>
    %275 = tpu.reciprocal %274 {approx = true} : vector<16x1xf32> -> vector<16x1xf32>
    %276 = vector.broadcast %275 : vector<16x1xf32> to vector<16x16xf32>
    %277 = arith.mulf %272, %276 : vector<16x16xf32>
    %278 = arith.truncf %277 : vector<16x16xf32> to vector<16x16xbf16>
    %279 = arith.truncf %260 : vector<16x16xf32> to vector<16x16xbf16>
    %cst_124 = arith.constant dense<0.000000e+00> : vector<16x16xf32>
    %280 = tpu.matmul %278, %279, %cst_124 {dimension_numbers = #tpu.dot_dimension_numbers<[1], [0], [0], [1], [0, 0, 1, 1], [], []>} : vector<16x16xbf16>, vector<16x16xbf16>, vector<16x16xf32> -> vector<16x16xf32>
    %281 = tpu.concatenate %257, %280 in 1 : vector<16x16xf32>, vector<16x16xf32> -> vector<16x32xf32>
    %282 = arith.truncf %281 : vector<16x32xf32> to vector<16x32xbf16>
    %cst_125 = arith.constant dense<0.000000e+00> : vector<16x32xf32>
    %283 = tpu.matmul %282, %212, %cst_125 {dimension_numbers = #tpu.dot_dimension_numbers<[1], [0], [0], [1], [0, 0, 1, 1], [], []>} : vector<16x32xbf16>, vector<32x32xbf16>, vector<16x32xf32> -> vector<16x32xf32>
    %284 = vector.broadcast %220 : vector<1x32xf32> to vector<16x32xf32>
    %285 = arith.addf %283, %284 : vector<16x32xf32>
    %286 = arith.addf %206, %285 : vector<16x32xf32>
    %cst_126 = arith.constant dense<0.000000e+00> : vector<16xf32>
    %287 = vector.multi_reduction <add>, %286, %cst_126 [1] : vector<16x32xf32> to vector<16xf32>
    %288 = vector.shape_cast %287 : vector<16xf32> to vector<16x1xf32>
    %cst_127 = arith.constant 3.200000e+01 : f32
    %289 = vector.broadcast %cst_127 : f32 to vector<16x1xf32>
    %290 = arith.divf %288, %289 : vector<16x1xf32>
    %291 = vector.broadcast %290 : vector<16x1xf32> to vector<16x32xf32>
    %292 = arith.subf %286, %291 : vector<16x32xf32>
    %293 = arith.mulf %292, %292 : vector<16x32xf32>
    %cst_128 = arith.constant dense<0.000000e+00> : vector<16xf32>
    %294 = vector.multi_reduction <add>, %293, %cst_128 [1] : vector<16x32xf32> to vector<16xf32>
    %295 = vector.shape_cast %294 : vector<16xf32> to vector<16x1xf32>
    %cst_129 = arith.constant 3.200000e+01 : f32
    %296 = vector.broadcast %cst_129 : f32 to vector<16x1xf32>
    %297 = arith.divf %295, %296 : vector<16x1xf32>
    %298 = vector.broadcast %290 : vector<16x1xf32> to vector<16x32xf32>
    %299 = arith.subf %286, %298 : vector<16x32xf32>
    %cst_130 = arith.constant 9.99999996E-13 : f32
    %300 = vector.broadcast %cst_130 : f32 to vector<16x1xf32>
    %301 = arith.addf %297, %300 : vector<16x1xf32>
    %302 = math.rsqrt %301 : vector<16x1xf32>
    %303 = vector.broadcast %302 : vector<16x1xf32> to vector<16x32xf32>
    %304 = arith.mulf %299, %303 : vector<16x32xf32>
    %305 = vector.broadcast %222 : vector<1x32xf32> to vector<16x32xf32>
    %306 = arith.mulf %304, %305 : vector<16x32xf32>
    %307 = vector.broadcast %224 : vector<1x32xf32> to vector<16x32xf32>
    %308 = arith.addf %306, %307 : vector<16x32xf32>
    %309 = arith.truncf %308 : vector<16x32xf32> to vector<16x32xbf16>
    %cst_131 = arith.constant dense<0.000000e+00> : vector<16x128xf32>
    %310 = tpu.matmul %309, %208, %cst_131 {dimension_numbers = #tpu.dot_dimension_numbers<[1], [0], [0], [1], [0, 0, 1, 1], [], []>} : vector<16x32xbf16>, vector<32x128xbf16>, vector<16x128xf32> -> vector<16x128xf32>
    %311 = vector.broadcast %216 : vector<1x128xf32> to vector<16x128xf32>
    %312 = arith.addf %310, %311 : vector<16x128xf32>
    %cst_132 = arith.constant 5.000000e-01 : f32
    %313 = vector.broadcast %cst_132 : f32 to vector<16x128xf32>
    %314 = arith.mulf %313, %312 : vector<16x128xf32>
    %cst_133 = arith.constant 4.471500e-02 : f32
    %315 = vector.broadcast %cst_133 : f32 to vector<16x128xf32>
    %316 = arith.mulf %315, %312 : vector<16x128xf32>
    %317 = arith.mulf %316, %312 : vector<16x128xf32>
    %318 = arith.mulf %317, %312 : vector<16x128xf32>
    %319 = arith.addf %312, %318 : vector<16x128xf32>
    %cst_134 = arith.constant 0.797884583 : f32
    %320 = vector.broadcast %cst_134 : f32 to vector<16x128xf32>
    %321 = arith.mulf %320, %319 : vector<16x128xf32>
    %322 = math.tanh %321 : vector<16x128xf32>
    %cst_135 = arith.constant 1.000000e+00 : f32
    %323 = vector.broadcast %cst_135 : f32 to vector<16x128xf32>
    %324 = arith.addf %323, %322 : vector<16x128xf32>
    %325 = arith.mulf %314, %324 : vector<16x128xf32>
    %326 = arith.truncf %325 : vector<16x128xf32> to vector<16x128xbf16>
    %cst_136 = arith.constant dense<0.000000e+00> : vector<16x32xf32>
    %327 = tpu.matmul %326, %214, %cst_136 {dimension_numbers = #tpu.dot_dimension_numbers<[1], [0], [0], [1], [0, 0, 1, 1], [], []>} : vector<16x128xbf16>, vector<128x32xbf16>, vector<16x32xf32> -> vector<16x32xf32>
    %328 = vector.broadcast %226 : vector<1x32xf32> to vector<16x32xf32>
    %329 = arith.addf %327, %328 : vector<16x32xf32>
    %330 = arith.addf %308, %329 : vector<16x32xf32>
    %cst_137 = arith.constant dense<0.000000e+00> : vector<16xf32>
    %331 = vector.multi_reduction <add>, %330, %cst_137 [1] : vector<16x32xf32> to vector<16xf32>
    %332 = vector.shape_cast %331 : vector<16xf32> to vector<16x1xf32>
    %cst_138 = arith.constant 3.200000e+01 : f32
    %333 = vector.broadcast %cst_138 : f32 to vector<16x1xf32>
    %334 = arith.divf %332, %333 : vector<16x1xf32>
    %335 = vector.broadcast %334 : vector<16x1xf32> to vector<16x32xf32>
    %336 = arith.subf %330, %335 : vector<16x32xf32>
    %337 = arith.mulf %336, %336 : vector<16x32xf32>
    %cst_139 = arith.constant dense<0.000000e+00> : vector<16xf32>
    %338 = vector.multi_reduction <add>, %337, %cst_139 [1] : vector<16x32xf32> to vector<16xf32>
    %339 = vector.shape_cast %338 : vector<16xf32> to vector<16x1xf32>
    %cst_140 = arith.constant 3.200000e+01 : f32
    %340 = vector.broadcast %cst_140 : f32 to vector<16x1xf32>
    %341 = arith.divf %339, %340 : vector<16x1xf32>
    %342 = vector.broadcast %334 : vector<16x1xf32> to vector<16x32xf32>
    %343 = arith.subf %330, %342 : vector<16x32xf32>
    %cst_141 = arith.constant 9.99999996E-13 : f32
    %344 = vector.broadcast %cst_141 : f32 to vector<16x1xf32>
    %345 = arith.addf %341, %344 : vector<16x1xf32>
    %346 = math.rsqrt %345 : vector<16x1xf32>
    %347 = vector.broadcast %346 : vector<16x1xf32> to vector<16x32xf32>
    %348 = arith.mulf %343, %347 : vector<16x32xf32>
    %349 = vector.broadcast %228 : vector<1x32xf32> to vector<16x32xf32>
    %350 = arith.mulf %348, %349 : vector<16x32xf32>
    %351 = vector.broadcast %230 : vector<1x32xf32> to vector<16x32xf32>
    %352 = arith.addf %350, %351 : vector<16x32xf32>
    %353 = vector.extract_strided_slice %352 {offsets = [0, 0], sizes = [8, 32], strides = [1, 1]} : vector<16x32xf32> to vector<8x32xf32>
    %354 = arith.truncf %353 : vector<8x32xf32> to vector<8x32xbf16>
    %c32_142 = arith.constant 32 : index
    %c0_143 = arith.constant 0 : index
    %355 = vector.load %arg3[%c32_142, %c0_143] : memref<64x128xbf16, #tpu.memory_space<vmem>>, vector<32x32xbf16>
    %c0_144 = arith.constant 0 : index
    %c0_145 = arith.constant 0 : index
    %356 = vector.load %arg3[%c0_144, %c0_145] : memref<64x128xbf16, #tpu.memory_space<vmem>>, vector<32x128xbf16>
    %c3_146 = arith.constant 3 : index
    %c0_147 = arith.constant 0 : index
    %357 = vector.load %arg2[%c3_146, %c0_147] : memref<8x128xf32, #tpu.memory_space<vmem>>, vector<1x32xf32>
    %c0_148 = arith.constant 0 : index
    %c0_149 = arith.constant 0 : index
    %358 = vector.load %arg2[%c0_148, %c0_149] : memref<8x128xf32, #tpu.memory_space<vmem>>, vector<1x128xf32>
    %cst_150 = arith.constant dense<0.000000e+00> : vector<8x32xf32>
    %359 = tpu.matmul %354, %355, %cst_150 {dimension_numbers = #tpu.dot_dimension_numbers<[1], [0], [0], [1], [0, 0, 1, 1], [], []>} : vector<8x32xbf16>, vector<32x32xbf16>, vector<8x32xf32> -> vector<8x32xf32>
    %360 = vector.broadcast %357 : vector<1x32xf32> to vector<8x32xf32>
    %361 = arith.addf %359, %360 : vector<8x32xf32>
    %362 = math.tanh %361 : vector<8x32xf32>
    %363 = arith.truncf %362 : vector<8x32xf32> to vector<8x32xbf16>
    %cst_151 = arith.constant dense<0.000000e+00> : vector<8x128xf32>
    %364 = tpu.matmul %363, %356, %cst_151 {dimension_numbers = #tpu.dot_dimension_numbers<[1], [0], [0], [1], [0, 0, 1, 1], [], []>} : vector<8x32xbf16>, vector<32x128xbf16>, vector<8x128xf32> -> vector<8x128xf32>
    %365 = vector.broadcast %358 : vector<1x128xf32> to vector<8x128xf32>
    %366 = arith.addf %364, %365 : vector<8x128xf32>
    %c0_152 = arith.constant 0 : index
    %c0_153 = arith.constant 0 : index
    %367 = vector.load %arg6[%c0_152, %c0_153] : memref<8x128xf32, #tpu.memory_space<vmem>>, vector<8x128xf32>
    tpu.vector_store %arg6[%c0_152, %c0_153], %366 {strides = array<i32>} : memref<8x128xf32, #tpu.memory_space<vmem>>, vector<8x128xf32>,
    return
  }
}

</mosaic_0001>

<bundles_post_ra>
// kernel: tpu_custom_call.1
= control target key start
LH: loop header
LB: loop body
LE: loop exit
PB: predicated region body
PF: predicated region fallthrough
CT: control target
= control target key end

     0   :  { %11 = vsyncpa [#allocation3], 0  ;;  %s2817_s0 = inlined_call_operand.hbm [shape: f32[16,32], index: 0, kind: input, shape index: {}]   ;;  %s2818_s1 = inlined_call_operand.vmem [shape: f32[1,16], index: 1, kind: input, shape index: {}]   ;;  %s2819_s2 = inlined_call_operand.hbm [shape: f32[8,128], index: 2, kind: input, shape index: {}]   ;;  %s2820_s3 = inlined_call_operand.hbm [shape: bf16[64,128], index: 3, kind: input, shape index: {}]   ;;  %s2821_s4 = inlined_call_operand.hbm [shape: bf16[2,224,128], index: 4, kind: input, shape index: {}]   ;;  %s2822_s5 = inlined_call_operand.vmem [shape: f32[2,8,128], index: 5, kind: input, shape index: {}]   ;;  %s2823_s6 = inlined_call_operand.hbm [shape: f32[8,128], index: 6, kind: output, shape index: {}]  }
   0x1   :  { %12 = vsyncpa [#allocation6], 0 }
   0x2   :  { %13 = vsyncpa [#allocation9], 0 }
   0x3   :  { %14 = vsyncpa [#allocation4], 0  ;;  %s2408_s21 = smov [#allocation5]   ;;  %s2409_s23 = smov [#allocation2]  }
   0x4   :  { %s35_s22 = sshll.u32 %s2408_s21, 4  ;;  %s20_s24 = sshll.u32 %s2409_s23, 4  ;;  %s36_s22 = int_to_ptr.vmem [resolvable:$true] %s35_s22  ;;  %s2459_s24 = int_to_ptr.vmem [resolvable:$true] %s20_s24 }
   0x5   :  { %s2290_s27 = scalar_lea.hbm %s2819_s2, 128 }
   0x6   :  { %p2291_p0 = scmp.ne.s32.totalorder %s2819_s2, %s2290_s27  ;;  %p2294_p1 = scmp.lt.u32.totalorder %s2290_s27, %s2819_s2 }
   0x8   :  { %p2296_p2 = pnand %p2294_p1, %p2291_p0 }
   0xa   :  { %2299 = shalt.err (!%p2296_p2)
}
   0xb   :  { %s2300_s8 = scalar_lea.vmem %s36_s22, 128  ;;  %p2305_p4 = scmp.lt.s32.totalorder %s36_s22, %s36_s22 }
   0xc   :  { %p2301_p3 = scmp.ne.s32.totalorder %s36_s22, %s2300_s8  ;;  %p2306_p5 = scmp.lt.s32.totalorder %s2300_s8, %s2300_s8 }
   0xe   :  { %p2307_p6 = por %p2306_p5, %p2305_p4 }
  0x10   :  { %p2308_p7 = pnand %p2307_p6, %p2301_p3 }
  0x12   :  { %2311 = shalt.err (!%p2308_p7)
}
  0x13   :  { %38 = dma.hbm_to_vmem [thread:$0]  %s2819_s2, 128, %s36_s22, [#allocation6]  }
  0x14   :  { %s2312_s13 = scalar_lea.hbm %s2817_s0, 256 }
  0x15   :  { %p2313_p8 = scmp.ne.s32.totalorder %s2817_s0, %s2312_s13  ;;  %p2316_p9 = scmp.lt.u32.totalorder %s2312_s13, %s2817_s0 }
  0x17   :  { %p2318_p10 = pnand %p2316_p9, %p2313_p8 }
  0x19   :  { %2321 = shalt.err (!%p2318_p10)
}
  0x1a   :  { %s2322_s18 = scalar_lea.vmem %s2459_s24, 256  ;;  %p2327_p12 = scmp.lt.s32.totalorder %s2459_s24, %s2459_s24 }
  0x1b   :  { %p2323_p11 = scmp.ne.s32.totalorder %s2459_s24, %s2322_s18  ;;  %p2328_p13 = scmp.lt.s32.totalorder %s2322_s18, %s2322_s18 }
  0x1d   :  { %p2329_p0 = por %p2328_p13, %p2327_p12 }
  0x1f   :  { %p2330_p1 = pnand %p2329_p0, %p2323_p11 }
  0x21   :  { %2333 = shalt.err (!%p2330_p1)
}
  0x22   :  { %s2410_s2 = smov 128   ;;  %s2411_s19 = smov 8  }
  0x23   :  { %26 = dma.hbm_to_vmem [thread:$0]  %s2817_s0, 256, %s2459_s24, [#allocation3], %s2410_s2, %s2410_s2, %s2411_s19  }
  0x24   :  { %s2412_s22 = smov [#allocation7]   ;;  %s2334_s27 = scalar_lea.hbm %s2820_s3, 512 }
  0x25   :  { %s44_s23 = sshll.u32 %s2412_s22, 4  ;;  %p2335_p2 = scmp.ne.s32.totalorder %s2820_s3, %s2334_s27  ;;  %s45_s23 = int_to_ptr.vmem [resolvable:$true] %s44_s23 }
  0x26   :  { %p2338_p3 = scmp.lt.u32.totalorder %s2334_s27, %s2820_s3 }
  0x28   :  { %p2340_p4 = pnand %p2338_p3, %p2335_p2 }
  0x2a   :  { %2343 = shalt.err (!%p2340_p4)
}
  0x2b   :  { %s2344_s8 = scalar_lea.vmem %s45_s23, 512  ;;  %p2349_p6 = scmp.lt.s32.totalorder %s45_s23, %s45_s23 }
  0x2c   :  { %p2345_p5 = scmp.ne.s32.totalorder %s45_s23, %s2344_s8  ;;  %p2350_p7 = scmp.lt.s32.totalorder %s2344_s8, %s2344_s8 }
  0x2e   :  { %p2351_p8 = por %p2350_p7, %p2349_p6 }
  0x30   :  { %p2352_p9 = pnand %p2351_p8, %p2345_p5 }
  0x32   :  { %2355 = shalt.err (!%p2352_p9)
}
  0x33   :  { %s2413_s0 = smov 64   ;;  %s2414_s24 = smov 4  }
  0x34   :  { %50 = dma.hbm_to_vmem [thread:$0]  %s2820_s3, 512, %s45_s23, [#allocation6], %s2413_s0, %s2413_s0, %s2414_s24  }
  0x35   :  { %s2415_s11 = smov [#allocation8]   ;;  %s2356_s15 = scalar_lea.hbm %s2821_s4, 3584 }
  0x36   :  { %s56_s12 = sshll.u32 %s2415_s11, 4  ;;  %p2357_p10 = scmp.ne.s32.totalorder %s2821_s4, %s2356_s15  ;;  %s57_s12 = int_to_ptr.vmem [resolvable:$true] %s56_s12 }
  0x37   :  { %p2360_p11 = scmp.lt.u32.totalorder %s2356_s15, %s2821_s4 }
  0x39   :  { %p2362_p12 = pnand %p2360_p11, %p2357_p10 }
  0x3b   :  { %2365 = shalt.err (!%p2362_p12)
}
  0x3c   :  { %s2366_s19 = scalar_lea.vmem %s57_s12, 3584  ;;  %p2371_p0 = scmp.lt.s32.totalorder %s57_s12, %s57_s12 }
  0x3d   :  { %p2367_p13 = scmp.ne.s32.totalorder %s57_s12, %s2366_s19  ;;  %p2372_p1 = scmp.lt.s32.totalorder %s2366_s19, %s2366_s19 }
  0x3f   :  { %p2373_p2 = por %p2372_p1, %p2371_p0 }
  0x41   :  { %p2374_p3 = pnand %p2373_p2, %p2367_p13 }
  0x43   :  { %2377 = shalt.err (!%p2374_p3)
}
  0x44   :  { %62 = dma.hbm_to_vmem [thread:$0]  %s2821_s4, 3584, %s57_s12, [#allocation9], %s2413_s0, %s2413_s0, %s2414_s24  }
  0x45   :  { %2400 = dma.done.wait [#allocation3], 256  }
  0x46   :  { %2401 = vsyncadd [#allocation3], 4294967040 }
  0x47   :  { %2402 = dma.done.wait [#allocation6], 640  }
  0x48   :  { %2403 = vsyncadd [#allocation6], 4294966656 }
  0x49   :  { %2404 = dma.done.wait [#allocation9], 3584  }
  0x4a   :  { %2405 = vsyncadd [#allocation9], 4294963712  ;;  %vm82_vm0 = vcmask 261120   ;;  %v80_v0 = vld [vmem:[#allocation2] sm:$0xff]  ;;  %v81_v1 = vld [vmem:[#allocation2 + $0x8] sm:$0xff]  ;;  %v2416_v15 = vmov 0.0   ;;  %v122_v53 = vlaneseq }
  0x4b   :  { %v83_v2 = vsel %vm82_vm0, %v80_v0, 0.0  ;;  %v86_v3 = vsel %vm82_vm0, %v81_v1, 0.0  ;;  %v2198_v14 = vld [vmem:[#allocation8 + $0x10] sm:$0xff]   ;;  %1972 = vmatprep.subr.bf16.mxu0 %v2416_v15  ;;  %v2199_v16 = vld [vmem:[#allocation8 + $0x18] sm:$0xff]   ;;  %vm2417_vm1 = vmmov 0   ;;  %vm269_vm2 = vcmask 130048  }
  0x4c   :  { %84 = vadd.xlane.f32.xlu0 %v83_v2  ;;  %1973 = vmatpush3.bf16.msra.mxu0 %v2198_v14  ;;  %v1817_v25 = vld [vmem:[#allocation5 + $0x1] ss:$0 sm:$0xff]  ;;  %v1818_v29 = vld [vmem:[#allocation5 + $0x2] ss:$0 sm:$0xff]  ;;  %v1819_v34 = vld [vmem:[%s2822_s5 + $0x1] ss:$0 sm:$0xff] }
  0x4d   :  { %1976 = vmatprep.mubr.msk.bf16.mxu0 %vm2417_vm1, %v2416_v15  ;;  %1974 = vmatprep.subr.bf16.mxu0 %v2416_v15  ;;  %s2418_s22 = smov 112   ;;  %s2419_s23 = smov 80   ;;  %vm2553_vm3 = vmpackc.low %vm269_vm2, %vm269_vm2  ;;  %v123_v54 = vshrl.u32 %v122_v53, 7  ;;  %v150_v56 = vand.u32 127, %v122_v53  ;;  %v2577_v60 = vld [vmem:[%s2818_s1] ss:$0 sm:$0xff] }
  0x4e   :  { %s2420_s25 = smov 96   ;;  %s2421_s1 = smov 48  }
  0x4f   :  { %v124_v55 = vadd.s32 8, %v123_v54  ;;  %v155_v58 = vand.u32 1, %v150_v56  ;;  %v129_v59 = vand.u32 1, %v123_v54  ;;  %s2422_s28 = smov 16  }
  0x50   :  { %87 = vadd.xlane.f32.xlu0 %v86_v3  ;;  %1975 = vmatpush3.bf16.msra.mxu0 %v2199_v16 }
  0x51   :  { %v136_v57 = vand.u32 1, %v124_v55  ;;  %vm2584_vm5 = vcmp.eq.s32.totalorder %v129_v59, %v155_v58 }
  0x53   :  { %vm2579_vm4 = vcmp.eq.s32.totalorder %v136_v57, %v155_v58 }
  0xd9   :  { %v85_v4 = vpop.xlane.xlu0 %84 }
  0xda   :  { %v90_v5 = vmul.f32 0.03125, %v85_v4 }
  0xdc   :  { %v92_v6 = vsub.f32 %v80_v0, %v90_v5 }
  0xdd   :  { %v88_v7 = vpop.xlane.xlu0 %87 }
  0xde   :  { %v91_v8 = vmul.f32 0.03125, %v88_v7  ;;  %v94_v9 = vmul.f32 %v92_v6, %v92_v6 }
  0xe0   :  { %v93_v10 = vsub.f32 %v81_v1, %v91_v8  ;;  %v96_v11 = vsel %vm82_vm0, %v94_v9, 0.0 }
  0xe1   :  { %97 = vadd.xlane.f32.xlu1 %v96_v11 }
  0xe2   :  { %v95_v12 = vmul.f32 %v93_v10, %v93_v10 }
  0xe4   :  { %v99_v13 = vsel %vm82_vm0, %v95_v12, 0.0 }
  0xe5   :  { %100 = vadd.xlane.f32.xlu1 %v99_v13 }
 0x16e   :  { %v98_v17 = vpop.xlane.xlu1 %97 }
 0x16f   :  { %v102_v18 = vmul.f32 0.03125, %v98_v17 }
 0x171   :  { %v104_v19 = vadd.f32 1e-12, %v102_v18 }
 0x172   :  { %v101_v20 = vpop.xlane.xlu1 %100 }
 0x173   :  { %2230 = vrsqrt.f32 %v104_v19  ;;  %v103_v21 = vmul.f32 0.03125, %v101_v20 }
 0x175   :  { %v105_v22 = vadd.f32 1e-12, %v103_v21 }
 0x177   :  { %2232 = vrsqrt.f32 %v105_v22 }
 0x17d   :  { %v2231_v23 = vpop.eup %2230 }
 0x17e   :  { %v108_v24 = vmul.f32 %v2231_v23, %v92_v6 }
 0x180   :  { %v114_v28 = vmul.f32 %v1817_v25, %v108_v24 }
 0x181   :  { %v2233_v26 = vpop.eup %2232 }
 0x182   :  { %v109_v27 = vmul.f32 %v2233_v26, %v93_v10  ;;  %v2526_v31 = vadd.f32 %v1818_v29, %v114_v28 }
 0x184   :  { %v115_v30 = vmul.f32 %v1817_v25, %v109_v27 }
 0x186   :  { %v2528_v32 = vadd.f32 %v1818_v29, %v115_v30 }
 0x188   :  { %v202_v33 = vpack.c.bf16 %v2528_v32, %v2526_v31 }
 0x18a   :  { %1977 = vmatmul.mubr.msk.bf16.vlgmr.msra.gmra.mrb[0].mxu0 %vm82_vm0, %v202_v33 }
 0x25d   :  { %v256_v35 = vpop.f32.mrb[0].mxu0 }
 0x25e   :  { %v2536_v36 = vadd.f32 %v1819_v34, %v256_v35  ;;  %v1978_v37 = vpop.f32.mrb[1].mxu0 }
 0x25f   :  { %v259_v38 = vpop.f32.mrb[2].mxu0 }
 0x260   :  { %v2538_v39 = vadd.f32 %v1819_v34, %v259_v38  ;;  %437 = vrot.lane.b32.xlu1 %v2536_v36, %s2418_s22  ;;  %v1979_v40 = vpop.f32.mrb[3].mxu0  ;;  %1984 = vmatprep.mubr.msk.f32.mxu1 %vm269_vm2, %v2536_v36 }
 0x262   :  { %v2168_v41 = vpack.i.bf16 %v2538_v39, %v2536_v36 }
 0x264   :  { %439 = vrot.lane.b32.xlu1 %v2538_v39, %s2418_s22  ;;  %2169 = vrot.lane.b32.xlu0 %v2168_v41, %s2419_s23 }
 0x268   :  { %2174 = vrot.lane.b32.xlu1 %v2168_v41, %s2420_s25 }
 0x2d2   :  { %v438_v42 = vpop.permute.xlu1 %437 }
 0x2d3   :  { %1997 = vmatprep.mubr.msk.f32.mxu0 %vm269_vm2, %v438_v42 }
 0x2d6   :  { %v440_v43 = vpop.permute.xlu1 %439  ;;  %v2170_v44 = vpop.permute.xlu0 %2169 }
 0x2d7   :  { %v2172_v45 = vunpack.i.h.bf16 %v2170_v44  ;;  %v2171_v46 = vunpack.i.l.bf16 %v2170_v44  ;;  %v388_v44 = vpack.c.bf16 %v2538_v39, %v2536_v36 }
 0x2d9   :  { %v2134_v48 = vpack.c.bf16 %v2172_v45, %v2171_v46 }
 0x2da   :  { %v2175_v49 = vpop.permute.xlu1 %2174 }
 0x2db   :  { %v2177_v50 = vunpack.i.h.bf16 %v2175_v49  ;;  %v2176_v51 = vunpack.i.l.bf16 %v2175_v49  ;;  %2136 = vmatprep.subr.msk.bf16.mxu0 %vm2553_vm3, %v2134_v48 }
 0x2dc   :  { %2139 = vmatpush3.bf16.xpose.msk.msra.mxu0 %vm2553_vm3, %v2134_v48 }
 0x2dd   :  { %v2128_v52 = vpack.c.bf16 %v2177_v50, %v2176_v51  ;;  %2000 = vmatprep.subr.bf16.mxu0 %v2416_v15 }
 0x2df   :  { %2130 = vmatprep.subr.msk.bf16.mxu1 %vm2553_vm3, %v2128_v52 }
 0x2e0   :  { %2133 = vmatpush3.bf16.xpose.msk.msra.mxu1 %vm2553_vm3, %v2128_v52 }
 0x2e1   :  { %1987 = vmatprep.subr.bf16.mxu1 %v2416_v15 }
 0x2e3   :  { %1998 = vmatmul.mubr.msk.f32.vlgmr.msra.gmra.mrb[4].mxu0 %vm269_vm2, %v440_v43 }
 0x2e4   :  { %2002 = vmatprep.mubr.msk.bf16.mxu0 %vm2417_vm1, %v2416_v15 }
 0x2e7   :  { %1985 = vmatmul.mubr.msk.f32.vlgmr.msra.gmra.mrb[0].mxu1 %vm269_vm2, %v2538_v39 }
 0x2e8   :  { %1989 = vmatprep.mubr.msk.bf16.mxu1 %vm2417_vm1, %v2416_v15 }
 0x3b6   :  { %v1999_v61 = vpop.f32.mrb[4].mxu0 }
 0x3b7   :  { %v529_v62 = vmul.f32 0.25, %v1999_v61  ;;  %v519_v63 = vpop.f32.mrb[5].mxu0  ;;  %v2200_v61 = vld [vmem:[#allocation8 + $0x20] sm:$0xff]  }
 0x3b8   :  { %v528_v0 = vmul.f32 0.25, %v519_v63 }
 0x3b9   :  { %v531_v2 = vadd.f32 %v2577_v60, %v529_v62  ;;  %v2201_v62 = vld [vmem:[#allocation8 + $0x28] sm:$0xff]  }
 0x3ba   :  { %v530_v4 = vadd.f32 %v2577_v60, %v528_v0  ;;  %v1986_v5 = vpop.f32.mrb[0].mxu1 }
 0x3bb   :  { %v354_v6 = vmul.f32 0.25, %v1986_v5  ;;  %v344_v7 = vpop.f32.mrb[1].mxu1  ;;  %v533_v8 = vsel %vm2579_vm4, %v531_v2, -1e+09 }
 0x3bc   :  { %v353_v9 = vmul.f32 0.25, %v344_v7  ;;  %v537_v10 = vsel %vm269_vm2, %v533_v8, -inf  ;;  %v532_v11 = vsel %vm2584_vm5, %v530_v4, -1e+09 }
 0x3bd   :  { %538 = vmax.xlane.f32.xlu1 %v537_v10  ;;  %v534_v12 = vsel %vm269_vm2, %v532_v11, -inf  ;;  %v362_v13 = vadd.f32 %v2577_v60, %v354_v6 }
 0x3be   :  { %v361_v14 = vadd.f32 %v2577_v60, %v353_v9  ;;  %535 = vmax.xlane.f32.xlu0 %v534_v12 }
 0x3bf   :  { %v364_v18 = vsel %vm2579_vm4, %v362_v13, -1e+09 }
 0x3c0   :  { %v363_v16 = vsel %vm2584_vm5, %v361_v14, -1e+09  ;;  %v368_v19 = vsel %vm269_vm2, %v364_v18, -inf }
 0x3c1   :  { %v365_v17 = vsel %vm269_vm2, %v363_v16, -inf }
 0x3c2   :  { %366 = vmax.xlane.f32.xlu0 %v365_v17  ;;  %v1834_v17 = vld [vmem:[%s2822_s5 + $0x2] ss:$0 sm:$0xff] }
 0x3c6   :  { %369 = vmax.xlane.f32.xlu0 %v368_v19 }
 0x44a   :  { %v539_v20 = vpop.xlane.xlu1 %538 }
 0x44b   :  { %v541_v21 = vsub.f32 %v533_v8, %v539_v20  ;;  %v536_v22 = vpop.xlane.xlu0 %535 }
 0x44c   :  { %v540_v23 = vsub.f32 %v532_v11, %v536_v22 }
 0x44d   :  { %v544_v24 = vmul.f32 1.442695, %v541_v21 }
 0x44e   :  { %v542_v25 = vmul.f32 1.442695, %v540_v23 }
 0x44f   :  { %2234 = vpow2.f32 %v544_v24  ;;  %v367_v26 = vpop.xlane.xlu0 %366 }
 0x450   :  { %2236 = vpow2.f32 %v542_v25  ;;  %v371_v27 = vsub.f32 %v363_v16, %v367_v26 }
 0x452   :  { %v373_v30 = vmul.f32 1.442695, %v371_v27 }
 0x453   :  { %v370_v28 = vpop.xlane.xlu0 %369 }
 0x454   :  { %v372_v29 = vsub.f32 %v364_v18, %v370_v28 }
 0x456   :  { %v375_v33 = vmul.f32 1.442695, %v372_v29 }
 0x458   :  { %2238 = vpow2.f32 %v375_v33 }
 0x459   :  { %v2235_v34 = vpop.eup %2234  ;;  %2240 = vpow2.f32 %v373_v30 }
 0x45a   :  { %v2237_v35 = vpop.eup %2236  ;;  %v549_v37 = vsel %vm269_vm2, %v2235_v34, 0.0 }
 0x45b   :  { %550 = vadd.xlane.f32.xlu1 %v549_v37  ;;  %v546_v38 = vsel %vm269_vm2, %v2237_v35, 0.0 }
 0x45c   :  { %547 = vadd.xlane.f32.xlu0 %v546_v38 }
 0x462   :  { %v2239_v40 = vpop.eup %2238 }
 0x463   :  { %v380_v41 = vsel %vm269_vm2, %v2239_v40, 0.0  ;;  %v2241_v42 = vpop.eup %2240 }
 0x464   :  { %381 = vadd.xlane.f32.xlu1 %v380_v41  ;;  %v377_v43 = vsel %vm269_vm2, %v2241_v42, 0.0  ;;  %v2202_v41 = vld [vmem:[#allocation8] sm:$0xff]  }
 0x468   :  { %378 = vadd.xlane.f32.xlu1 %v377_v43 }
 0x472   :  { %557 = vrot.lane.b32.xlu0 %v388_v44, %s2421_s1 }
 0x479   :  { %390 = vrot.lane.b32.xlu1 %v388_v44, %s2413_s0 }
 0x4e8   :  { %v551_v45 = vpop.xlane.xlu1 %550 }
 0x4e9   :  { %2242 = vrcp.f32 %v551_v45  ;;  %v548_v46 = vpop.xlane.xlu0 %547 }
 0x4ea   :  { %2244 = vrcp.f32 %v548_v46 }
 0x4ed   :  { %v558_v48 = vpop.permute.xlu0 %557 }
 0x4ee   :  { %2001 = vmatpush3.bf16.msra.mxu0 %v558_v48 }
 0x4ef   :  { %2014 = vmatprep.subr.bf16.mxu0 %v2416_v15 }
 0x4f1   :  { %v382_v49 = vpop.xlane.xlu1 %381 }
 0x4f2   :  { %2246 = vrcp.f32 %v382_v49 }
 0x4f3   :  { %v2243_v50 = vpop.eup %2242 }
 0x4f4   :  { %v2245_v51 = vpop.eup %2244  ;;  %v555_v52 = vmul.f32 %v2243_v50, %v2235_v34 }
 0x4f5   :  { %v554_v53 = vmul.f32 %v2245_v51, %v2237_v35  ;;  %v379_v36 = vpop.xlane.xlu1 %378  ;;  %v1838_v51 = vld [vmem:[%s2822_s5 + $0x3] ss:$0 sm:$0xff] }
 0x4f6   :  { %2248 = vrcp.f32 %v379_v36 }
 0x4f7   :  { %v556_v39 = vpack.c.bf16 %v555_v52, %v554_v53 }
 0x4f9   :  { %v391_v54 = vpop.permute.xlu1 %390  ;;  %2003 = vmatmul.mubr.msk.bf16.vlgmr.msra.gmra.mrb[8].mxu0 %vm269_vm2, %v556_v39  ;;  %v1839_v39 = vld [vmem:[%s2822_s5 + $0x4] ss:$0 sm:$0xff] }
 0x4fa   :  { %1988 = vmatpush3.bf16.msra.mxu1 %v391_v54  ;;  %2018 = vmatprep.mubr.msk.bf16.mxu0 %vm2417_vm1, %v2416_v15 }
 0x4fb   :  { %2006 = vmatprep.subr.bf16.mxu1 %v2416_v15  ;;  %2015 = vmatpush3.bf16.msra.mxu0 %v2202_v41 }
 0x4fc   :  { %v2247_v55 = vpop.eup %2246  ;;  %2016 = vmatprep.subr.bf16.mxu0 %v2416_v15 }
 0x4fd   :  { %v386_v57 = vmul.f32 %v2247_v55, %v2239_v40 }
 0x500   :  { %v2249_v56 = vpop.eup %2248 }
 0x501   :  { %v385_v58 = vmul.f32 %v2249_v56, %v2241_v42 }
 0x503   :  { %v387_v59 = vpack.c.bf16 %v386_v57, %v385_v58  ;;  %v2204_v58 = vld [vmem:[#allocation8 + $0x30] sm:$0xff]  }
 0x505   :  { %1990 = vmatmul.mubr.msk.bf16.vlgmr.msra.gmra.mrb[4].mxu1 %vm269_vm2, %v387_v59  ;;  %v2205_v59 = vld [vmem:[#allocation8 + $0x38] sm:$0xff]  }
 0x506   :  { %2010 = vmatprep.mubr.msk.bf16.mxu1 %vm2417_vm1, %v2416_v15  ;;  %2007 = vmatpush3.bf16.msra.mxu1 %v2200_v61  ;;  %v2206_v61 = vld [vmem:[#allocation8 + $0x40] sm:$0xff]  }
 0x507   :  { %2008 = vmatprep.subr.bf16.mxu1 %v2416_v15 }
 0x50a   :  { %2009 = vmatpush3.bf16.msra.mxu1 %v2201_v62  ;;  %v2207_v62 = vld [vmem:[#allocation8 + $0x48] sm:$0xff]  }
 0x50b   :  { %2022 = vmatprep.subr.bf16.mxu1 %v2416_v15 }
 0x5cc   :  { %v597_v63 = vpop.f32.mrb[8].mxu0 }
 0x5cd   :  { %v2004_v0 = vpop.f32.mrb[9].mxu0 }
 0x5ce   :  { %v600_v2 = vpop.f32.mrb[10].mxu0  ;;  %v2209_v0 = vld [vmem:[#allocation8 + $0x58] sm:$0xff]  }
 0x5cf   :  { %v2178_v4 = vpack.i.bf16 %v600_v2, %v597_v63  ;;  %v2005_v5 = vpop.f32.mrb[11].mxu0  ;;  %v2208_v63 = vld [vmem:[#allocation8 + $0x50] sm:$0xff]   ;;  %v2210_v2 = vld [vmem:[#allocation8 + $0x60] sm:$0xff]  }
 0x5d0   :  { %v1840_v5 = vld [vmem:[%s2822_s5] ss:$0 sm:$0xff] }
 0x5d1   :  { %2179 = vrot.lane.b32.xlu0 %v2178_v4, %s2422_s28  ;;  %v2211_v4 = vld [vmem:[#allocation8 + $0x68] sm:$0xff]  }
 0x5d8   :  { %v430_v6 = vpop.f32.mrb[4].mxu1 }
 0x5d9   :  { %v1991_v7 = vpop.f32.mrb[5].mxu1 }
 0x5da   :  { %v433_v8 = vpop.f32.mrb[6].mxu1 }
 0x5db   :  { %v1992_v9 = vpop.f32.mrb[7].mxu1 }
 0x643   :  { %v2180_v10 = vpop.permute.xlu0 %2179 }
 0x644   :  { %v2182_v11 = vunpack.i.h.bf16 %v2180_v10  ;;  %v2181_v12 = vunpack.i.l.bf16 %v2180_v10 }
 0x646   :  { %v613_v13 = vsel %vm269_vm2, %v433_v8, %v2182_v11  ;;  %v612_v14 = vsel %vm269_vm2, %v430_v6, %v2181_v12 }
 0x647   :  { %v614_v16 = vpack.c.bf16 %v613_v13, %v612_v14 }
 0x649   :  { %2011 = vmatmul.mubr.msk.bf16.vlgmr.msra.gmra.mrb[8].mxu1 %vm82_vm0, %v614_v16 }
 0x64a   :  { %2038 = vmatprep.mubr.msk.bf16.mxu1 %vm2417_vm1, %v2416_v15  ;;  %2023 = vmatpush3.bf16.msra.mxu1 %v2204_v58 }
 0x64b   :  { %2024 = vmatprep.subr.bf16.mxu1 %v2416_v15 }
 0x64e   :  { %2025 = vmatpush3.bf16.msra.mxu1 %v2205_v59 }
 0x64f   :  { %2026 = vmatprep.subr.bf16.mxu1 %v2416_v15 }
 0x652   :  { %2027 = vmatpush3.bf16.msra.mxu1 %v2206_v61 }
 0x653   :  { %2028 = vmatprep.subr.bf16.mxu1 %v2416_v15 }
 0x656   :  { %2029 = vmatpush3.bf16.msra.mxu1 %v2207_v62 }
 0x657   :  { %2030 = vmatprep.subr.bf16.mxu1 %v2416_v15 }
 0x65a   :  { %2031 = vmatpush3.bf16.msra.mxu1 %v2208_v63 }
 0x65b   :  { %2032 = vmatprep.subr.bf16.mxu1 %v2416_v15 }
 0x65e   :  { %2033 = vmatpush3.bf16.msra.mxu1 %v2209_v0  ;;  %v1853_v0 = vld [vmem:[%s2822_s5 + $0x6] ss:$0 sm:$0xff] }
 0x65f   :  { %2034 = vmatprep.subr.bf16.mxu1 %v2416_v15 }
 0x662   :  { %2035 = vmatpush3.bf16.msra.mxu1 %v2210_v2 }
 0x663   :  { %2036 = vmatprep.subr.bf16.mxu1 %v2416_v15 }
 0x666   :  { %2037 = vmatpush3.bf16.msra.mxu1 %v2211_v4 }
 0x667   :  { %2076 = vmatprep.subr.bf16.mxu1 %v2416_v15 }
 0x71c   :  { %v668_v18 = vpop.f32.mrb[8].mxu1 }
 0x71d   :  { %v669_v19 = vadd.f32 %v1834_v17, %v668_v18  ;;  %v2012_v20 = vpop.f32.mrb[9].mxu1 }
 0x71e   :  { %v671_v21 = vpop.f32.mrb[10].mxu1 }
 0x71f   :  { %v672_v22 = vadd.f32 %v1834_v17, %v671_v21  ;;  %v2013_v23 = vpop.f32.mrb[11].mxu1  ;;  %v675_v24 = vadd.f32 %v669_v19, %v2526_v31 }
 0x721   :  { %v677_v25 = vsel %vm82_vm0, %v675_v24, 0.0  ;;  %v676_v26 = vadd.f32 %v672_v22, %v2528_v32  ;;  %v2203_v32 = vld [vmem:[#allocation8 + $0x8] sm:$0xff]  }
 0x722   :  { %678 = vadd.xlane.f32.xlu1 %v677_v25  ;;  %2017 = vmatpush3.bf16.msra.mxu0 %v2203_v32 }
 0x723   :  { %v680_v27 = vsel %vm82_vm0, %v676_v26, 0.0  ;;  %2042 = vmatprep.subr.bf16.mxu0 %v2416_v15 }
 0x724   :  { %681 = vadd.xlane.f32.xlu0 %v680_v27 }
 0x7af   :  { %v679_v28 = vpop.xlane.xlu1 %678 }
 0x7b0   :  { %v683_v29 = vmul.f32 0.03125, %v679_v28 }
 0x7b1   :  { %v682_v30 = vpop.xlane.xlu0 %681 }
 0x7b2   :  { %v685_v33 = vsub.f32 %v675_v24, %v683_v29  ;;  %v684_v34 = vmul.f32 0.03125, %v682_v30 }
 0x7b4   :  { %v686_v35 = vsub.f32 %v676_v26, %v684_v34  ;;  %v687_v37 = vmul.f32 %v685_v33, %v685_v33  ;;  %v1844_v34 = vld [vmem:[%s2822_s5 + $0x5] ss:$0 sm:$0xff] }
 0x7b6   :  { %v689_v38 = vsel %vm82_vm0, %v687_v37, 0.0  ;;  %v688_v40 = vmul.f32 %v686_v35, %v686_v35 }
 0x7b7   :  { %690 = vadd.xlane.f32.xlu0 %v689_v38 }
 0x7b8   :  { %v692_v31 = vsel %vm82_vm0, %v688_v40, 0.0 }
 0x7bb   :  { %693 = vadd.xlane.f32.xlu0 %v692_v31 }
 0x844   :  { %v691_v42 = vpop.xlane.xlu0 %690 }
 0x845   :  { %v695_v43 = vmul.f32 0.03125, %v691_v42 }
 0x847   :  { %v697_v44 = vadd.f32 1e-12, %v695_v43 }
 0x848   :  { %v694_v45 = vpop.xlane.xlu0 %693 }
 0x849   :  { %2250 = vrsqrt.f32 %v697_v44  ;;  %v696_v46 = vmul.f32 0.03125, %v694_v45 }
 0x84b   :  { %v698_v48 = vadd.f32 1e-12, %v696_v46 }
 0x84d   :  { %2252 = vrsqrt.f32 %v698_v48 }
 0x853   :  { %v2251_v49 = vpop.eup %2250 }
 0x854   :  { %v701_v50 = vmul.f32 %v2251_v49, %v685_v33 }
 0x856   :  { %v707_v53 = vmul.f32 %v1838_v51, %v701_v50 }
 0x857   :  { %v2253_v52 = vpop.eup %2252 }
 0x858   :  { %v702_v36 = vmul.f32 %v2253_v52, %v686_v35  ;;  %v2644_v55 = vadd.f32 %v1839_v39, %v707_v53 }
 0x85a   :  { %v708_v54 = vmul.f32 %v1838_v51, %v702_v36 }
 0x85c   :  { %v2646_v56 = vadd.f32 %v1839_v39, %v708_v54  ;;  %v2212_v54 = vld [vmem:[#allocation8 + $0x80] sm:$0xff]  }
 0x85e   :  { %v715_v57 = vpack.c.bf16 %v2646_v56, %v2644_v55 }
 0x860   :  { %2019 = vmatmul.mubr.msk.bf16.vlgmr.msra.gmra.mrb[12].mxu0 %vm82_vm0, %v715_v57 }
 0x861   :  { %2046 = vmatprep.mubr.msk.bf16.mxu0 %vm2417_vm1, %v2416_v15  ;;  %2043 = vmatpush3.bf16.msra.mxu0 %v2212_v54 }
 0x862   :  { %2044 = vmatprep.subr.bf16.mxu0 %v2416_v15 }
 0x933   :  { %v769_v6 = vpop.f32.mrb[12].mxu0 }
 0x934   :  { %v770_v7 = vadd.f32 %v1840_v5, %v769_v6  ;;  %v2020_v8 = vpop.f32.mrb[13].mxu0 }
 0x935   :  { %v772_v9 = vpop.f32.mrb[14].mxu0 }
 0x936   :  { %v778_v10 = vmul.f32 0.044715, %v770_v7  ;;  %v773_v11 = vadd.f32 %v1840_v5, %v772_v9  ;;  %v2021_v12 = vpop.f32.mrb[15].mxu0  ;;  %v776_v26 = vmul.f32 0.5, %v770_v7 }
 0x937   :  { %v1863_v12 = vld [vmem:[%s2822_s5 + $0x9] ss:$0 sm:$0xff] }
 0x938   :  { %v780_v13 = vmul.f32 %v778_v10, %v770_v7  ;;  %v779_v14 = vmul.f32 0.044715, %v773_v11  ;;  %v777_v27 = vmul.f32 0.5, %v773_v11 }
 0x93a   :  { %v782_v16 = vmul.f32 %v780_v13, %v770_v7  ;;  %v781_v17 = vmul.f32 %v779_v14, %v773_v11 }
 0x93c   :  { %v784_v18 = vadd.f32 %v782_v16, %v770_v7  ;;  %v783_v19 = vmul.f32 %v781_v17, %v773_v11  ;;  %v1854_v7 = vld [vmem:[%s2822_s5 + $0x7] ss:$0 sm:$0xff] }
 0x93e   :  { %v786_v20 = vmul.f32 0.7978846, %v784_v18  ;;  %v785_v21 = vadd.f32 %v783_v19, %v773_v11 }
 0x940   :  { %2254 = vtanh.f32 %v786_v20  ;;  %v787_v22 = vmul.f32 0.7978846, %v785_v21 }
 0x942   :  { %2256 = vtanh.f32 %v787_v22 }
 0x94a   :  { %v2255_v23 = vpop.eup %2254 }
 0x94b   :  { %v790_v24 = vadd.f32 1.0, %v2255_v23 }
 0x94c   :  { %v2257_v25 = vpop.eup %2256 }
 0x94d   :  { %v791_v28 = vadd.f32 1.0, %v2257_v25  ;;  %v792_v29 = vmul.f32 %v790_v24, %v776_v26 }
 0x94f   :  { %v793_v30 = vmul.f32 %v791_v28, %v777_v27 }
 0x951   :  { %v794_v33 = vpack.c.bf16 %v793_v30, %v792_v29 }
 0x953   :  { %2039 = vmatmul.mubr.bf16.vlgmr.msra.gmra.mrb[12].mxu1 %v794_v33 }
 0x954   :  { %2080 = vmatprep.mubr.msk.bf16.mxu1 %vm2417_vm1, %v2416_v15 }
 0xa26   :  { %v881_v35 = vpop.f32.mrb[12].mxu1 }
 0xa27   :  { %v882_v37 = vadd.f32 %v1844_v34, %v881_v35  ;;  %v2040_v38 = vpop.f32.mrb[13].mxu1 }
 0xa28   :  { %v884_v40 = vpop.f32.mrb[14].mxu1 }
 0xa29   :  { %v885_v31 = vadd.f32 %v1844_v34, %v884_v40  ;;  %v2041_v41 = vpop.f32.mrb[15].mxu1  ;;  %v888_v32 = vadd.f32 %v882_v37, %v2644_v55  ;;  %v2213_v55 = vld [vmem:[#allocation8 + $0x88] sm:$0xff]  }
 0xa2a   :  { %2045 = vmatpush3.bf16.msra.mxu0 %v2213_v55 }
 0xa2b   :  { %v890_v42 = vsel %vm82_vm0, %v888_v32, 0.0  ;;  %v889_v43 = vadd.f32 %v885_v31, %v2646_v56 }
 0xa2c   :  { %891 = vadd.xlane.f32.xlu1 %v890_v42 }
 0xa2d   :  { %v893_v44 = vsel %vm82_vm0, %v889_v43, 0.0 }
 0xa2e   :  { %894 = vadd.xlane.f32.xlu0 %v893_v44 }
 0xab9   :  { %v892_v45 = vpop.xlane.xlu1 %891 }
 0xaba   :  { %v896_v46 = vmul.f32 0.03125, %v892_v45 }
 0xabb   :  { %v895_v48 = vpop.xlane.xlu0 %894 }
 0xabc   :  { %v898_v49 = vsub.f32 %v888_v32, %v896_v46  ;;  %v897_v50 = vmul.f32 0.03125, %v895_v48 }
 0xabe   :  { %v899_v51 = vsub.f32 %v889_v43, %v897_v50  ;;  %v900_v52 = vmul.f32 %v898_v49, %v898_v49 }
 0xac0   :  { %v902_v53 = vsel %vm82_vm0, %v900_v52, 0.0  ;;  %v901_v36 = vmul.f32 %v899_v51, %v899_v51 }
 0xac1   :  { %903 = vadd.xlane.f32.xlu1 %v902_v53 }
 0xac2   :  { %v905_v39 = vsel %vm82_vm0, %v901_v36, 0.0 }
 0xac3   :  { %906 = vadd.xlane.f32.xlu0 %v905_v39 }
 0xb4e   :  { %v904_v56 = vpop.xlane.xlu1 %903 }
 0xb4f   :  { %v908_v57 = vmul.f32 0.03125, %v904_v56 }
 0xb50   :  { %v907_v58 = vpop.xlane.xlu0 %906 }
 0xb51   :  { %v910_v59 = vadd.f32 1e-12, %v908_v57  ;;  %v909_v61 = vmul.f32 0.03125, %v907_v58 }
 0xb53   :  { %2258 = vrsqrt.f32 %v910_v59  ;;  %v911_v62 = vadd.f32 1e-12, %v909_v61 }
 0xb55   :  { %2260 = vrsqrt.f32 %v911_v62 }
 0xb5d   :  { %v2259_v63 = vpop.eup %2258 }
 0xb5e   :  { %v914_v2 = vmul.f32 %v2259_v63, %v898_v49 }
 0xb5f   :  { %v2261_v4 = vpop.eup %2260 }
 0xb60   :  { %v920_v5 = vmul.f32 %v1853_v0, %v914_v2  ;;  %v915_v6 = vmul.f32 %v2261_v4, %v899_v51 }
 0xb62   :  { %v921_v8 = vmul.f32 %v1853_v0, %v915_v6  ;;  %v2682_v9 = vadd.f32 %v1854_v7, %v920_v5 }
 0xb64   :  { %v2684_v10 = vadd.f32 %v1854_v7, %v921_v8 }
 0xb66   :  { %v966_v11 = vpack.c.bf16 %v2684_v10, %v2682_v9 }
 0xb68   :  { %2047 = vmatmul.mubr.msk.bf16.vlgmr.msra.gmra.mrb[16].mxu0 %vm82_vm0, %v966_v11 }
 0xc3b   :  { %v1020_v13 = vpop.f32.mrb[16].mxu0 }
 0xc3c   :  { %v1021_v14 = vadd.f32 %v1863_v12, %v1020_v13  ;;  %v2048_v16 = vpop.f32.mrb[17].mxu0 }
 0xc3d   :  { %v1023_v17 = vpop.f32.mrb[18].mxu0 }
 0xc3e   :  { %v1024_v18 = vadd.f32 %v1863_v12, %v1023_v17  ;;  %v2049_v19 = vpop.f32.mrb[19].mxu0  ;;  %2054 = vmatprep.mubr.msk.f32.mxu0 %vm269_vm2, %v1021_v14 }
 0xc40   :  { %v2183_v20 = vpack.i.bf16 %v1024_v18, %v1021_v14  ;;  %v2694_v21 = vpack.c.bf16 %v1024_v18, %v1021_v14 }
 0xc42   :  { %2184 = vrot.lane.b32.xlu1 %v2183_v20, %s2420_s25 }
 0xc46   :  { %1147 = vrot.lane.b32.xlu1 %v2694_v21, %s2413_s0 }
 0xc4a   :  { %1194 = vrot.lane.b32.xlu1 %v1021_v14, %s2418_s22 }
 0xc4e   :  { %1196 = vrot.lane.b32.xlu1 %v1024_v18, %s2418_s22 }
 0xcb4   :  { %v2185_v22 = vpop.permute.xlu1 %2184 }
 0xcb5   :  { %v2187_v23 = vunpack.i.h.bf16 %v2185_v22  ;;  %v2186_v24 = vunpack.i.l.bf16 %v2185_v22 }
 0xcb7   :  { %v2140_v25 = vpack.c.bf16 %v2187_v23, %v2186_v24 }
 0xcb8   :  { %v1148_v26 = vpop.permute.xlu1 %1147 }
 0xcb9   :  { %2142 = vmatprep.subr.msk.bf16.mxu0 %vm2553_vm3, %v2140_v25 }
 0xcba   :  { %2145 = vmatpush3.bf16.xpose.msk.msra.mxu0 %vm2553_vm3, %v2140_v25 }
 0xcbb   :  { %2057 = vmatprep.subr.bf16.mxu0 %v2416_v15 }
 0xcbc   :  { %v1195_v59 = vpop.permute.xlu1 %1194 }
 0xcc0   :  { %v1197_v61 = vpop.permute.xlu1 %1196 }
 0xcc1   :  { %2055 = vmatmul.mubr.msk.f32.vlgmr.msra.gmra.mrb[6].mxu0 %vm269_vm2, %v1024_v18 }
 0xcc2   :  { %2058 = vmatpush3.bf16.msra.mxu0 %v1148_v26  ;;  %2059 = vmatprep.mubr.msk.bf16.mxu0 %vm2417_vm1, %v2416_v15 }
 0xd94   :  { %v2056_v27 = vpop.f32.mrb[6].mxu0 }
 0xd95   :  { %v1117_v28 = vmul.f32 0.25, %v2056_v27  ;;  %v1107_v29 = vpop.f32.mrb[7].mxu0 }
 0xd96   :  { %v1116_v30 = vmul.f32 0.25, %v1107_v29 }
 0xd97   :  { %v1119_v33 = vadd.f32 %v2577_v60, %v1117_v28 }
 0xd98   :  { %v1118_v34 = vadd.f32 %v2577_v60, %v1116_v30 }
 0xd99   :  { %v1121_v38 = vsel %vm2579_vm4, %v1119_v33, -1e+09  ;;  %v2214_v33 = vld [vmem:[#allocation8 + $0x90] sm:$0xff]  }
 0xd9a   :  { %v1120_v35 = vsel %vm2584_vm5, %v1118_v34, -1e+09  ;;  %v1125_v40 = vsel %vm269_vm2, %v1121_v38, -inf  ;;  %2077 = vmatpush3.bf16.msra.mxu1 %v2214_v33  ;;  %v2215_v34 = vld [vmem:[#allocation8 + $0x98] sm:$0xff]  }
 0xd9b   :  { %v1122_v37 = vsel %vm269_vm2, %v1120_v35, -inf  ;;  %2078 = vmatprep.subr.bf16.mxu1 %v2416_v15 }
 0xd9c   :  { %1123 = vmax.xlane.f32.xlu0 %v1122_v37 }
 0xd9e   :  { %2079 = vmatpush3.bf16.msra.mxu1 %v2215_v34 }
 0xd9f   :  { %2092 = vmatprep.subr.bf16.mxu1 %v2416_v15 }
 0xda0   :  { %1126 = vmax.xlane.f32.xlu0 %v1125_v40 }
 0xe29   :  { %v1124_v31 = vpop.xlane.xlu0 %1123 }
 0xe2a   :  { %v1128_v41 = vsub.f32 %v1120_v35, %v1124_v31 }
 0xe2c   :  { %v1130_v43 = vmul.f32 1.442695, %v1128_v41 }
 0xe2d   :  { %v1127_v32 = vpop.xlane.xlu0 %1126 }
 0xe2e   :  { %v1129_v42 = vsub.f32 %v1121_v38, %v1127_v32 }
 0xe30   :  { %v1132_v44 = vmul.f32 1.442695, %v1129_v42 }
 0xe32   :  { %2262 = vpow2.f32 %v1132_v44 }
 0xe33   :  { %2264 = vpow2.f32 %v1130_v43 }
 0xe3c   :  { %v2263_v45 = vpop.eup %2262 }
 0xe3d   :  { %v1137_v46 = vsel %vm269_vm2, %v2263_v45, 0.0  ;;  %v2265_v48 = vpop.eup %2264 }
 0xe3e   :  { %1138 = vadd.xlane.f32.xlu0 %v1137_v46  ;;  %v1134_v49 = vsel %vm269_vm2, %v2265_v48, 0.0  ;;  %v1877_v46 = vld [vmem:[%s2822_s5 + $0xa] ss:$0 sm:$0xff] }
 0xe42   :  { %1135 = vadd.xlane.f32.xlu0 %v1134_v49 }
 0xe58   :  { %2189 = vrot.lane.b32.xlu0 %v2183_v20, %s2419_s23 }
 0xecb   :  { %v1139_v50 = vpop.xlane.xlu0 %1138 }
 0xecc   :  { %2266 = vrcp.f32 %v1139_v50 }
 0xecf   :  { %v1136_v51 = vpop.xlane.xlu0 %1135 }
 0xed0   :  { %2268 = vrcp.f32 %v1136_v51 }
 0xed3   :  { %v2190_v52 = vpop.permute.xlu0 %2189 }
 0xed4   :  { %v2192_v53 = vunpack.i.h.bf16 %v2190_v52  ;;  %v2191_v36 = vunpack.i.l.bf16 %v2190_v52 }
 0xed6   :  { %v2146_v39 = vpack.c.bf16 %v2192_v53, %v2191_v36  ;;  %v2267_v54 = vpop.eup %2266 }
 0xed7   :  { %v1143_v56 = vmul.f32 %v2267_v54, %v2263_v45 }
 0xed8   :  { %2148 = vmatprep.subr.msk.bf16.mxu0 %vm2553_vm3, %v2146_v39 }
 0xeda   :  { %v2269_v55 = vpop.eup %2268 }
 0xedb   :  { %v1142_v57 = vmul.f32 %v2269_v55, %v2265_v48 }
 0xedd   :  { %v1144_v58 = vpack.c.bf16 %v1143_v56, %v1142_v57 }
 0xedf   :  { %2060 = vmatmul.mubr.msk.bf16.vlgmr.msra.gmra.mrb[20].mxu0 %vm269_vm2, %v1144_v58 }
 0xee0   :  { %2151 = vmatpush3.bf16.xpose.msk.msra.mxu0 %vm2553_vm3, %v2146_v39  ;;  %2067 = vmatprep.mubr.msk.f32.mxu0 %vm269_vm2, %v1195_v59 }
 0xee1   :  { %2070 = vmatprep.subr.bf16.mxu0 %v2416_v15 }
 0xee7   :  { %2068 = vmatmul.mubr.msk.f32.vlgmr.msra.gmra.mrb[24].mxu0 %vm269_vm2, %v1197_v61 }
 0xee8   :  { %2072 = vmatprep.mubr.msk.bf16.mxu0 %vm2417_vm1, %v2416_v15 }
 0xfb2   :  { %v1187_v62 = vpop.f32.mrb[20].mxu0 }
 0xfb3   :  { %v2061_v63 = vpop.f32.mrb[21].mxu0 }
 0xfb4   :  { %v1190_v0 = vpop.f32.mrb[22].mxu0 }
 0xfb5   :  { %v2062_v2 = vpop.f32.mrb[23].mxu0 }
 0xfba   :  { %v2069_v4 = vpop.f32.mrb[24].mxu0 }
 0xfbb   :  { %v1286_v5 = vmul.f32 0.25, %v2069_v4  ;;  %v1276_v6 = vpop.f32.mrb[25].mxu0  ;;  %v2216_v4 = vld [vmem:[#allocation8 + $0x70] sm:$0xff]  }
 0xfbc   :  { %v1285_v7 = vmul.f32 0.25, %v1276_v6 }
 0xfbd   :  { %v1288_v47 = vadd.f32 %v2577_v60, %v1286_v5 }
 0xfbe   :  { %v1287_v8 = vadd.f32 %v2577_v60, %v1285_v7 }
 0xfbf   :  { %v1290_v11 = vsel %vm2579_vm4, %v1288_v47, -1e+09 }
 0xfc0   :  { %v1294_v12 = vsel %vm269_vm2, %v1290_v11, -inf  ;;  %v1289_v13 = vsel %vm2584_vm5, %v1287_v8, -1e+09 }
 0xfc1   :  { %1295 = vmax.xlane.f32.xlu0 %v1294_v12  ;;  %v1291_v14 = vsel %vm269_vm2, %v1289_v13, -inf }
 0xfc2   :  { %1292 = vmax.xlane.f32.xlu1 %v1291_v14 }
 0xfd7   :  { %1314 = vrot.lane.b32.xlu0 %v2694_v21, %s2421_s1 }
0x104e   :  { %v1296_v16 = vpop.xlane.xlu0 %1295 }
0x104f   :  { %v1298_v17 = vsub.f32 %v1290_v11, %v1296_v16  ;;  %v1293_v18 = vpop.xlane.xlu1 %1292 }
0x1050   :  { %v1297_v19 = vsub.f32 %v1289_v13, %v1293_v18  ;;  %v1881_v13 = vld [vmem:[%s2822_s5 + $0xb] ss:$0 sm:$0xff] }
0x1051   :  { %v1301_v60 = vmul.f32 1.442695, %v1298_v17 }
0x1052   :  { %v1299_v20 = vmul.f32 1.442695, %v1297_v19  ;;  %v1315_v1 = vpop.permute.xlu0 %1314  ;;  %v1882_v19 = vld [vmem:[%s2822_s5 + $0xc] ss:$0 sm:$0xff] }
0x1053   :  { %2071 = vmatpush3.bf16.msra.mxu0 %v1315_v1 }
0x1054   :  { %2270 = vpow2.f32 %v1299_v20  ;;  %2084 = vmatprep.subr.bf16.mxu0 %v2416_v15 }
0x1055   :  { %2272 = vpow2.f32 %v1301_v60 }
0x105e   :  { %v2271_v3 = vpop.eup %2270 }
0x105f   :  { %v1303_v22 = vsel %vm269_vm2, %v2271_v3, 0.0  ;;  %v2273_v23 = vpop.eup %2272 }
0x1060   :  { %1304 = vadd.xlane.f32.xlu1 %v1303_v22  ;;  %v1306_v24 = vsel %vm269_vm2, %v2273_v23, 0.0  ;;  %v2218_v22 = vld [vmem:[#allocation8 + $0xa0] sm:$0xff]  }
0x1064   :  { %1307 = vadd.xlane.f32.xlu1 %v1306_v24  ;;  %v2220_v24 = vld [vmem:[#allocation8 + $0xb0] sm:$0xff]  }
0x10ed   :  { %v1305_v21 = vpop.xlane.xlu1 %1304 }
0x10ee   :  { %2274 = vrcp.f32 %v1305_v21  ;;  %v2221_v21 = vld [vmem:[#allocation8 + $0xb8] sm:$0xff]  }
0x10f1   :  { %v1308_v25 = vpop.xlane.xlu1 %1307 }
0x10f2   :  { %2276 = vrcp.f32 %v1308_v25  ;;  %v2222_v25 = vld [vmem:[#allocation8 + $0xc0] sm:$0xff]  }
0x10f8   :  { %v2275_v26 = vpop.eup %2274 }
0x10f9   :  { %v1311_v28 = vmul.f32 %v2275_v26, %v2271_v3  ;;  %v2223_v26 = vld [vmem:[#allocation8 + $0xc8] sm:$0xff]  }
0x10fc   :  { %v2277_v27 = vpop.eup %2276 }
0x10fd   :  { %v1312_v29 = vmul.f32 %v2277_v27, %v2273_v23  ;;  %v2219_v23 = vld [vmem:[#allocation8 + $0xa8] sm:$0xff]   ;;  %v2224_v27 = vld [vmem:[#allocation8 + $0xd0] sm:$0xff]  }
0x10ff   :  { %v1313_v30 = vpack.c.bf16 %v1312_v29, %v1311_v28  ;;  %v2225_v28 = vld [vmem:[#allocation8 + $0xd8] sm:$0xff]   ;;  %v1883_v29 = vld [vmem:[%s2822_s5 + $0x8] ss:$0 sm:$0xff] }
0x1101   :  { %2073 = vmatmul.mubr.msk.bf16.vlgmr.msra.gmra.mrb[28].mxu0 %vm269_vm2, %v1313_v30 }
0x1102   :  { %2088 = vmatprep.mubr.msk.bf16.mxu0 %vm2417_vm1, %v2416_v15  ;;  %2085 = vmatpush3.bf16.msra.mxu0 %v2216_v4 }
0x1103   :  { %2086 = vmatprep.subr.bf16.mxu0 %v2416_v15 }
0x11d4   :  { %v1354_v35 = vpop.f32.mrb[28].mxu0 }
0x11d5   :  { %v2074_v37 = vpop.f32.mrb[29].mxu0 }
0x11d6   :  { %v1357_v38 = vpop.f32.mrb[30].mxu0 }
0x11d7   :  { %v2193_v40 = vpack.i.bf16 %v1357_v38, %v1354_v35  ;;  %v2075_v31 = vpop.f32.mrb[31].mxu0 }
0x11d9   :  { %2194 = vrot.lane.b32.xlu1 %v2193_v40, %s2422_s28 }
0x124b   :  { %v2195_v41 = vpop.permute.xlu1 %2194 }
0x124c   :  { %v2197_v32 = vunpack.i.h.bf16 %v2195_v41  ;;  %v2196_v42 = vunpack.i.l.bf16 %v2195_v41 }
0x124e   :  { %v1370_v43 = vsel %vm269_vm2, %v1190_v0, %v2197_v32  ;;  %v1369_v44 = vsel %vm269_vm2, %v1187_v62, %v2196_v42 }
0x124f   :  { %v1371_v45 = vpack.c.bf16 %v1370_v43, %v1369_v44 }
0x1251   :  { %2081 = vmatmul.mubr.msk.bf16.vlgmr.msra.gmra.mrb[16].mxu1 %vm82_vm0, %v1371_v45 }
0x1252   :  { %2108 = vmatprep.mubr.msk.bf16.mxu1 %vm2417_vm1, %v2416_v15  ;;  %2093 = vmatpush3.bf16.msra.mxu1 %v2218_v22 }
0x1253   :  { %2094 = vmatprep.subr.bf16.mxu1 %v2416_v15 }
0x1256   :  { %2095 = vmatpush3.bf16.msra.mxu1 %v2219_v23 }
0x1257   :  { %2096 = vmatprep.subr.bf16.mxu1 %v2416_v15 }
0x125a   :  { %2097 = vmatpush3.bf16.msra.mxu1 %v2220_v24 }
0x125b   :  { %2098 = vmatprep.subr.bf16.mxu1 %v2416_v15 }
0x125e   :  { %2099 = vmatpush3.bf16.msra.mxu1 %v2221_v21 }
0x125f   :  { %2100 = vmatprep.subr.bf16.mxu1 %v2416_v15 }
0x1262   :  { %2101 = vmatpush3.bf16.msra.mxu1 %v2222_v25 }
0x1263   :  { %2102 = vmatprep.subr.bf16.mxu1 %v2416_v15 }
0x1266   :  { %2103 = vmatpush3.bf16.msra.mxu1 %v2223_v26 }
0x1267   :  { %2104 = vmatprep.subr.bf16.mxu1 %v2416_v15 }
0x126a   :  { %2105 = vmatpush3.bf16.msra.mxu1 %v2224_v27  ;;  %v1902_v27 = vld [vmem:[#allocation5] ss:$0 sm:$0xff] }
0x126b   :  { %2106 = vmatprep.subr.bf16.mxu1 %v2416_v15 }
0x126e   :  { %2107 = vmatpush3.bf16.msra.mxu1 %v2225_v28 }
0x1324   :  { %v1425_v48 = vpop.f32.mrb[16].mxu1 }
0x1325   :  { %v1426_v49 = vadd.f32 %v1877_v46, %v1425_v48  ;;  %v2082_v50 = vpop.f32.mrb[17].mxu1 }
0x1326   :  { %v1428_v51 = vpop.f32.mrb[18].mxu1 }
0x1327   :  { %v1429_v52 = vadd.f32 %v1877_v46, %v1428_v51  ;;  %v2083_v53 = vpop.f32.mrb[19].mxu1  ;;  %v1432_v36 = vadd.f32 %v1426_v49, %v2682_v9 }
0x1329   :  { %v1434_v39 = vsel %vm82_vm0, %v1432_v36, 0.0  ;;  %v1433_v54 = vadd.f32 %v1429_v52, %v2684_v10  ;;  %v2217_v10 = vld [vmem:[#allocation8 + $0x78] sm:$0xff]  }
0x132a   :  { %1435 = vadd.xlane.f32.xlu1 %v1434_v39  ;;  %2087 = vmatpush3.bf16.msra.mxu0 %v2217_v10 }
0x132b   :  { %v1437_v55 = vsel %vm82_vm0, %v1433_v54, 0.0  ;;  %2112 = vmatprep.subr.bf16.mxu0 %v2416_v15 }
0x132c   :  { %1438 = vadd.xlane.f32.xlu0 %v1437_v55 }
0x13b7   :  { %v1436_v56 = vpop.xlane.xlu1 %1435 }
0x13b8   :  { %v1440_v57 = vmul.f32 0.03125, %v1436_v56  ;;  %v1887_v56 = vld [vmem:[%s2822_s5 + $0xd] ss:$0 sm:$0xff] }
0x13b9   :  { %v1439_v58 = vpop.xlane.xlu0 %1438 }
0x13ba   :  { %v1442_v59 = vsub.f32 %v1432_v36, %v1440_v57  ;;  %v1441_v61 = vmul.f32 0.03125, %v1439_v58 }
0x13bc   :  { %v1443_v62 = vsub.f32 %v1433_v54, %v1441_v61  ;;  %v1444_v63 = vmul.f32 %v1442_v59, %v1442_v59 }
0x13be   :  { %v1446_v0 = vsel %vm82_vm0, %v1444_v63, 0.0  ;;  %v1445_v2 = vmul.f32 %v1443_v62, %v1443_v62 }
0x13bf   :  { %1447 = vadd.xlane.f32.xlu0 %v1446_v0 }
0x13c0   :  { %v1449_v9 = vsel %vm82_vm0, %v1445_v2, 0.0 }
0x13c1   :  { %1450 = vadd.xlane.f32.xlu1 %v1449_v9 }
0x144c   :  { %v1448_v5 = vpop.xlane.xlu0 %1447 }
0x144d   :  { %v1452_v6 = vmul.f32 0.03125, %v1448_v5 }
0x144e   :  { %v1451_v7 = vpop.xlane.xlu1 %1450 }
0x144f   :  { %v1454_v47 = vadd.f32 1e-12, %v1452_v6  ;;  %v1453_v8 = vmul.f32 0.03125, %v1451_v7  ;;  %v2226_v6 = vld [vmem:[#allocation7 + $0x10] sm:$0xff]   ;;  %v2227_v7 = vld [vmem:[#allocation7 + $0x18] sm:$0xff]  }
0x1451   :  { %2278 = vrsqrt.f32 %v1454_v47  ;;  %v1455_v11 = vadd.f32 1e-12, %v1453_v8 }
0x1453   :  { %2280 = vrsqrt.f32 %v1455_v11 }
0x145b   :  { %v2279_v12 = vpop.eup %2278 }
0x145c   :  { %v1458_v14 = vmul.f32 %v2279_v12, %v1442_v59 }
0x145d   :  { %v2281_v16 = vpop.eup %2280 }
0x145e   :  { %v1464_v17 = vmul.f32 %v1881_v13, %v1458_v14  ;;  %v1459_v18 = vmul.f32 %v2281_v16, %v1443_v62  ;;  %v1897_v16 = vld [vmem:[%s2822_s5 + $0xf] ss:$0 sm:$0xff] }
0x1460   :  { %v1465_v60 = vmul.f32 %v1881_v13, %v1459_v18  ;;  %v2770_v20 = vadd.f32 %v1882_v19, %v1464_v17  ;;  %v1896_v13 = vld [vmem:[%s2822_s5 + $0xe] ss:$0 sm:$0xff]  ;;  %s2423_s5 = smov [#allocation10]  }
0x1461   :  { %s1806_s30 = sshll.u32 %s2423_s5, 4  ;;  %s1807_s30 = int_to_ptr.vmem [resolvable:$true] %s1806_s30 }
0x1462   :  { %v1471_v1 = vadd.f32 %v1882_v19, %v1465_v60  ;;  %v2228_v60 = vld [vmem:[#allocation7] sm:$0xff]   ;;  %s2378_s7 = scalar_lea.vmem %s1807_s30, 128  ;;  %p2383_p5 = scmp.lt.s32.totalorder %s1807_s30, %s1807_s30 }
0x1463   :  { %p2379_p4 = scmp.ne.s32.totalorder %s1807_s30, %s2378_s7  ;;  %p2384_p6 = scmp.lt.s32.totalorder %s2378_s7, %s2378_s7 }
0x1464   :  { %v1472_v3 = vpack.c.bf16 %v1471_v1, %v2770_v20  ;;  %v1898_v1 = vld [vmem:[#allocation5 + $0x3] ss:$0 sm:$0xff] }
0x1465   :  { %p2385_p7 = por %p2384_p6, %p2383_p5 }
0x1466   :  { %2089 = vmatmul.mubr.msk.bf16.vlgmr.msra.gmra.mrb[32].mxu0 %vm82_vm0, %v1472_v3 }
0x1467   :  { %2116 = vmatprep.mubr.msk.bf16.mxu0 %vm2417_vm1, %v2416_v15  ;;  %2113 = vmatpush3.bf16.msra.mxu0 %v2226_v6  ;;  %p2386_p8 = pnand %p2385_p7, %p2379_p4 }
0x1468   :  { %2114 = vmatprep.subr.bf16.mxu0 %v2416_v15 }
0x146b   :  { %2115 = vmatpush3.bf16.msra.mxu0 %v2227_v7 }
0x146c   :  { %2120 = vmatprep.subr.bf16.mxu0 %v2416_v15 }
0x1539   :  { %v1526_v30 = vpop.f32.mrb[32].mxu0 }
0x153a   :  { %v1527_v33 = vadd.f32 %v1883_v29, %v1526_v30  ;;  %v2090_v34 = vpop.f32.mrb[33].mxu0 }
0x153b   :  { %v1529_v35 = vpop.f32.mrb[34].mxu0 }
0x153c   :  { %v1535_v37 = vmul.f32 0.044715, %v1527_v33  ;;  %v1530_v38 = vadd.f32 %v1883_v29, %v1529_v35  ;;  %v2091_v40 = vpop.f32.mrb[35].mxu0  ;;  %v1533_v52 = vmul.f32 0.5, %v1527_v33 }
0x153e   :  { %v1537_v31 = vmul.f32 %v1535_v37, %v1527_v33  ;;  %v1536_v41 = vmul.f32 0.044715, %v1530_v38  ;;  %v1534_v53 = vmul.f32 0.5, %v1530_v38 }
0x1540   :  { %v1539_v32 = vmul.f32 %v1537_v31, %v1527_v33  ;;  %v1538_v42 = vmul.f32 %v1536_v41, %v1530_v38 }
0x1542   :  { %v1541_v43 = vadd.f32 %v1539_v32, %v1527_v33  ;;  %v1540_v44 = vmul.f32 %v1538_v42, %v1530_v38 }
0x1544   :  { %v1543_v45 = vmul.f32 0.7978846, %v1541_v43  ;;  %v1542_v46 = vadd.f32 %v1540_v44, %v1530_v38 }
0x1546   :  { %2282 = vtanh.f32 %v1543_v45  ;;  %v1544_v48 = vmul.f32 0.7978846, %v1542_v46 }
0x1548   :  { %2284 = vtanh.f32 %v1544_v48 }
0x1550   :  { %v2283_v49 = vpop.eup %2282 }
0x1551   :  { %v1547_v50 = vadd.f32 1.0, %v2283_v49 }
0x1552   :  { %v2285_v51 = vpop.eup %2284 }
0x1553   :  { %v1548_v36 = vadd.f32 1.0, %v2285_v51  ;;  %v1549_v39 = vmul.f32 %v1547_v50, %v1533_v52 }
0x1555   :  { %v1550_v54 = vmul.f32 %v1548_v36, %v1534_v53 }
0x1557   :  { %v1551_v55 = vpack.c.bf16 %v1550_v54, %v1549_v39 }
0x1559   :  { %2109 = vmatmul.mubr.bf16.vlgmr.msra.gmra.mrb[20].mxu1 %v1551_v55 }
0x162c   :  { %v1638_v57 = vpop.f32.mrb[20].mxu1 }
0x162d   :  { %v1639_v58 = vadd.f32 %v1887_v56, %v1638_v57  ;;  %v2110_v59 = vpop.f32.mrb[21].mxu1 }
0x162e   :  { %v1641_v61 = vpop.f32.mrb[22].mxu1 }
0x162f   :  { %v2111_v62 = vpop.f32.mrb[23].mxu1  ;;  %v1644_v63 = vadd.f32 %v1639_v58, %v2770_v20  ;;  %v2229_v20 = vld [vmem:[#allocation7 + $0x8] sm:$0xff]  }
0x1631   :  { %v1645_v0 = vsel %vm82_vm0, %v1644_v63, 0.0 }
0x1632   :  { %1646 = vadd.xlane.f32.xlu0 %v1645_v0 }
0x16bf   :  { %v1647_v2 = vpop.xlane.xlu0 %1646 }
0x16c0   :  { %v1648_v9 = vmul.f32 0.03125, %v1647_v2 }
0x16c2   :  { %v1649_v4 = vsub.f32 %v1644_v63, %v1648_v9 }
0x16c4   :  { %v1650_v10 = vmul.f32 %v1649_v4, %v1649_v4 }
0x16c6   :  { %v1651_v5 = vsel %vm82_vm0, %v1650_v10, 0.0 }
0x16c7   :  { %1652 = vadd.xlane.f32.xlu1 %v1651_v5 }
0x1754   :  { %v1653_v47 = vpop.xlane.xlu1 %1652 }
0x1755   :  { %v1654_v8 = vmul.f32 0.03125, %v1653_v47 }
0x1757   :  { %v1655_v11 = vadd.f32 1e-12, %v1654_v8 }
0x1759   :  { %2286 = vrsqrt.f32 %v1655_v11 }
0x1763   :  { %v2287_v12 = vpop.eup %2286 }
0x1764   :  { %v1657_v14 = vmul.f32 %v2287_v12, %v1649_v4 }
0x1766   :  { %v1662_v17 = vmul.f32 %v1896_v13, %v1657_v14 }
0x1768   :  { %v1667_v18 = vadd.f32 %v1897_v16, %v1662_v17 }
0x176a   :  { %v1668_v19 = vpack.c.bf16 %v1667_v18, %v1667_v18 }
0x176c   :  { %2117 = vmatmul.mubr.msk.bf16.vlgmr.msra.gmra.mrb[36].mxu0 %vm82_vm0, %v1668_v19 }
0x176d   :  { %2124 = vmatprep.mubr.msk.bf16.mxu0 %vm2417_vm1, %v2416_v15  ;;  %2121 = vmatpush3.bf16.msra.mxu0 %v2228_v60 }
0x176e   :  { %2122 = vmatprep.subr.bf16.mxu0 %v2416_v15 }
0x1771   :  { %2123 = vmatpush3.bf16.msra.mxu0 %v2229_v20 }
0x183f   :  { %v1732_v3 = vpop.f32.mrb[36].mxu0 }
0x1840   :  { %v1733_v22 = vadd.f32 %v1898_v1, %v1732_v3  ;;  %v2118_v23 = vpop.f32.mrb[37].mxu0 }
0x1841   :  { %v1735_v24 = vpop.f32.mrb[38].mxu0 }
0x1842   :  { %2288 = vtanh.f32 %v1733_v22  ;;  %v2119_v21 = vpop.f32.mrb[39].mxu0 }
0x184c   :  { %v2289_v25 = vpop.eup %2288 }
0x184d   :  { %v1739_v26 = vpack.c.bf16 %v2289_v25, %v2289_v25 }
0x184f   :  { %2125 = vmatmul.mubr.msk.bf16.vlgmr.msra.gmra.mrb[40].mxu0 %vm82_vm0, %v1739_v26 }
0x1922   :  { %v1793_v28 = vpop.f32.mrb[40].mxu0 }
0x1923   :  { %v1794_v29 = vadd.f32 %v1902_v27, %v1793_v28  ;;  %v2126_v30 = vpop.f32.mrb[41].mxu0 }
0x1924   :  { %v1796_v15 = vpop.f32.mrb[42].mxu0 }
0x1925   :  { %1799 = vst [vmem:[#allocation10] sm:$0xff] %v1794_v29  ;;  %v2127_v33 = vpop.f32.mrb[43].mxu0 }
0x1926   :  { %2389 = shalt.err (!%p2386_p8)
}
0x1927   :  { %s2390_s9 = scalar_lea.hbm %s2823_s6, 128 }
0x1928   :  { %p2391_p9 = scmp.ne.s32.totalorder %s2823_s6, %s2390_s9  ;;  %p2394_p10 = scmp.lt.u32.totalorder %s2390_s9, %s2823_s6 }
0x192a   :  { %p2396_p11 = pnand %p2394_p10, %p2391_p9 }
0x192c   :  { %2399 = shalt.err (!%p2396_p11)
}
0x192d   :  { %1809 = dma.vmem_to_hbm [thread:$0]  %s1807_s30, 128, %s2823_s6, [#allocation4]  }
0x192e   :  { %2406 = dma.done.wait [#allocation4], 128  }
0x192f   :  { %2407 = vsyncadd [#allocation4], 4294967168 }
0x1930   :  { %1813 = vsyncpa [#allocation3], 1 }
0x1931   :  { %1814 = vsyncpa [#allocation6], 1 }
0x1932   :  { %1815 = vsyncpa [#allocation9], 1 }
0x1933   :  { %1816 = vsyncpa [#allocation4], 1 }

</bundles_post_ra>
